<compile_context>
chip_gen: v5e
topology: v5e:2x2
jax: 0.10.0
libtpu: 0.0.40
codegen_flags: <defaults>
</compile_context>

<pallas_src>
import functools

import jax
import jax.numpy as jnp
from jax.experimental import pallas as pl
from jax.experimental.pallas import tpu as pltpu

_SUBLANES = 8
_SPLIT_MIN_ROWS = 1024     # only split a single-tile batch across 2 grid steps
_MIN_TILE_ROWS = 256       # don't shrink tiles below this when fitting VMEM


def _round_up(v, m):
    return ((v + m - 1) // m) * m


def _cheby_kan_kernel(x_ref, c_ref, o_ref, h_ref, *, degree, input_dims):
    """One batch tile of the FasterChebyKAN forward.

    x_ref: (TB, I) input tile.      c_ref: ((D+1)*I, O) coefficient matrix.
    o_ref: (TB, O) output tile.     h_ref: (TB, (D+1)*I) matmul-dtype scratch.

    NOTE: rows past the real batch in the (partial) last grid step contain
    garbage; every row is computed independently and Pallas masks their output
    writeback, so this is safe -- do not add any cross-row reduction here
    without revisiting that assumption.
    """
    idm = input_dims
    x = jnp.tanh(x_ref[...].astype(jnp.float32))

    # Chebyshev recurrence in f32 (|x| <= 1 so every T_d stays in [-1, 1]).
    # Each T_d is streamed directly into the matmul-dtype scratch
    # H = [T_0 | T_1 | ... | T_D]; no (TB, K) f32 concat or second full-tile
    # cast pass is materialized and only two f32 T's stay live at a time.
    h_ref[:, 0:idm] = jnp.ones_like(x).astype(h_ref.dtype)            # T_0
    if degree >= 1:
        h_ref[:, idm:2 * idm] = x.astype(h_ref.dtype)                 # T_1
        two_x = 2.0 * x                                               # hoisted
        t_prev, t_cur = jnp.ones_like(x), x
        for d in range(2, degree + 1):
            t_prev, t_cur = t_cur, two_x * t_cur - t_prev
            h_ref[:, d * idm:(d + 1) * idm] = t_cur.astype(h_ref.dtype)

    # Single fused MXU matmul over K = (D+1)*I with f32 accumulation.  The
    # output block uses the full (unpadded) last dim -> minimum HBM writeback
    # and no post-kernel slice.
    o_ref[...] = jnp.dot(h_ref[...], c_ref[...],
                         preferred_element_type=jnp.float32).astype(o_ref.dtype)


def prepare_cheby_coeffs(cheby_coeffs, *, matmul_dtype=jnp.bfloat16):
    """Hoisted coefficient preprocessing (do this once, not per forward call).

    (I, O, D+1) -> ((D+1)*I, O) in matmul dtype, laid out so that row d*I + i
    multiplies T_d(x[:, i]), matching H = [T_0 | ... | T_D] built in-kernel.
    """
    i_dim, o_dim, dp1 = cheby_coeffs.shape
    c2d = jnp.transpose(cheby_coeffs, (2, 0, 1)).reshape(dp1 * i_dim, o_dim)
    return c2d.astype(matmul_dtype)


def cheby_kan_forward(x, coeffs_2d, *, input_dims, output_dims, degree,
                      tile_b=4096, matmul_dtype=jnp.bfloat16, out_dtype=None):
    """x: any shape with numel divisible by input_dims.
    coeffs_2d: ((degree+1)*input_dims, output_dims) from prepare_cheby_coeffs.
    Returns (numel // input_dims, output_dims)."""
    x2 = jnp.reshape(x, (-1, input_dims))
    b = x2.shape[0]
    k = (degree + 1) * input_dims
    assert coeffs_2d.shape == (k, output_dims), coeffs_2d.shape
    coeffs_2d = coeffs_2d.astype(matmul_dtype)

    out_dt = jnp.dtype(out_dtype) if out_dtype is not None else x2.dtype
    x_isz = jnp.dtype(x2.dtype).itemsize
    o_isz = jnp.dtype(out_dt).itemsize
    c_isz = jnp.dtype(matmul_dtype).itemsize

    # ---- batch tile selection -------------------------------------------
    tile_b = max(_SUBLANES, _round_up(int(tile_b), _SUBLANES))
    if b > tile_b:
        tb = tile_b
    elif b >= _SPLIT_MIN_ROWS:
        # The whole batch would fit one tile; still emit >= 2 grid steps so the
        # "parallel" batch axis can be split across both TensorCores on v7x.
        tb = _round_up(pl.cdiv(b, 2), _SUBLANES)
    else:
        tb = b                       # single full-dim tile (b need not be %8)

    # ---- generation-aware VMEM budget -------------------------------------
    try:
        vmem_cap = int(pltpu.get_tpu_info().vmem_capacity_bytes)
    except Exception:
        vmem_cap = 128 * 1024 * 1024
    vmem_budget = min(int(0.75 * vmem_cap), 56 * 1024 * 1024)

    def vmem_est(tb_):
        return (2 * tb_ * input_dims * x_isz       # double-buffered x tiles
                + 2 * tb_ * output_dims * o_isz    # double-buffered out tiles
                + tb_ * k * c_isz                  # H scratch (single copy)
                + 2 * k * output_dims * c_isz      # resident coeffs (<= 2 bufs)
                + 5 * tb_ * input_dims * 4         # rolling f32 T's / temps
                + tb_ * output_dims * 4)           # f32 matmul result temp

    while tb > _MIN_TILE_ROWS and vmem_est(tb) > vmem_budget:
        tb = _round_up(tb // 2, _SUBLANES)
    # TODO(synk): for very large (degree+1)*I*O the resident coefficient matrix
    # alone can exceed the VMEM budget; that regime needs a K-tiled "arbitrary"
    # grid axis with an f32 accumulator scratch (not implemented here).

    grid = (pl.cdiv(b, tb),)
    vmem_limit = int(min(0.85 * vmem_cap,
                         max(32 * 1024 * 1024, 2 * vmem_est(tb))))

    cost = pl.CostEstimate(
        flops=2 * b * k * output_dims,
        transcendentals=b * input_dims,
        bytes_accessed=(b * input_dims * x_isz
                        + b * output_dims * o_isz
                        + k * output_dims * c_isz))

    kernel = functools.partial(_cheby_kan_kernel, degree=degree,
                               input_dims=input_dims)

    def call(coeff_spec):
        return pl.pallas_call(
            kernel,
            out_shape=jax.ShapeDtypeStruct((b, output_dims), out_dt),
            grid_spec=pltpu.PrefetchScalarGridSpec(
                num_scalar_prefetch=0,
                grid=grid,
                in_specs=[
                    pl.BlockSpec((tb, input_dims), lambda i: (i, 0)),
                    coeff_spec,                           # resident coefficients
                ],
                out_specs=pl.BlockSpec((tb, output_dims), lambda i: (i, 0)),
                scratch_shapes=[pltpu.VMEM((tb, k), matmul_dtype)],
            ),
            compiler_params=pltpu.CompilerParams(
                dimension_semantics=("parallel",),
                vmem_limit_bytes=vmem_limit),
            cost_estimate=cost,
        )(x2, coeffs_2d)

    # The coefficient index_map is constant, so double-buffering it only doubles
    # its VMEM footprint (matters most under v7x's 64 MiB per-TC VMEM).  Request
    # a single buffer; fall back to default buffering if this JAX build rejects
    # pipeline_mode=pl.Buffered(1).
    try:
        return call(pl.BlockSpec((k, output_dims), lambda i: (0, 0),
                                 pipeline_mode=pl.Buffered(1)))
    except Exception:
        return call(pl.BlockSpec((k, output_dims), lambda i: (0, 0)))


def _reference(x, cheby_coeffs, input_dims, degree):
    """Pure-JAX reference mirroring the PyTorch forward (acos / *arange / cos)."""
    x = jnp.reshape(x, (-1, input_dims)).astype(jnp.float32)
    x = jnp.tanh(x)
    theta = jnp.arccos(x)[..., None] * jnp.arange(degree + 1, dtype=jnp.float32)
    t = jnp.cos(theta)                                   # (B, I, D+1)
    return jnp.einsum('bid,iod->bo', t, cheby_coeffs.astype(jnp.float32))


if __name__ == "__main__":
    # Module config (small, TPU-friendly).
    input_dims = 16
    output_dims = 32
    degree = 3

    key = jax.random.PRNGKey(0)
    kx, kc = jax.random.split(key)

    # NCHW-style input, flattened to (-1, input_dims) inside -> B = 128 rows.
    x = jax.random.normal(kx, (2, 4, 16, 16), dtype=jnp.float32)

    # Deterministic init: normal, std = 1 / (input_dims * (degree + 1)).
    std = 1.0 / (input_dims * (degree + 1))
    cheby_coeffs = std * jax.random.normal(
        kc, (input_dims, output_dims, degree + 1), dtype=jnp.float32)

    # Coefficient layout/cast hoisted out of the per-call path.
    c2d = prepare_cheby_coeffs(cheby_coeffs)

    y = cheby_kan_forward(x, c2d, input_dims=input_dims,
                          output_dims=output_dims, degree=degree)
    y = jax.block_until_ready(y)
    y_ref = _reference(x, cheby_coeffs, input_dims, degree)

    assert y.shape == (x.size // input_dims, output_dims), y.shape
    # bf16 matmul operands (f32 accumulation) vs f32 reference -> relaxed tol.
    err = float(jnp.max(jnp.abs(y - y_ref)))
    assert err < 1e-2, err

    # Also exercise the multi-step grid (2 full tiles) and a partial last tile.
    for small_tile in (64, 48):
        y2 = jax.block_until_ready(
            cheby_kan_forward(x, c2d, input_dims=input_dims,
                              output_dims=output_dims, degree=degree,
                              tile_b=small_tile))
        err2 = float(jnp.max(jnp.abs(y2 - y_ref)))
        assert err2 < 1e-2, (small_tile, err2)

    print("KERNEL_OK")
</pallas_src>

<mosaic_0001>
module attributes {stable_mosaic.version = 11 : i64} {
  func.func @_cheby_kan_kernel(%arg0: i32, %arg1: memref<128x16xf32, #tpu.memory_space<vmem>>, %arg2: memref<64x32xbf16, #tpu.memory_space<vmem>>, %arg3: memref<128x32xf32, #tpu.memory_space<vmem>>, %arg4: memref<128x64xbf16, #tpu.memory_space<vmem>>) attributes {dimension_semantics = [#tpu.dimension_semantics<parallel>], iteration_bounds = array<i64: 1>, scalar_prefetch = 0 : i64, scratch_operands = 1 : i64, tpu.core_type = #tpu.core_type<tc>, window_params = [{transform_indices = @transform_0, window_bounds = array<i64: 128, 16>}, {pipeline_mode = #tpu.pipeline_mode<synchronous>, transform_indices = @transform_1, window_bounds = array<i64: 64, 32>}, {transform_indices = @transform_2, window_bounds = array<i64: 128, 32>}]} {
    %c0 = arith.constant 0 : index
    %c0_0 = arith.constant 0 : index
    %0 = vector.load %arg1[%c0, %c0_0] : memref<128x16xf32, #tpu.memory_space<vmem>>, vector<128x16xf32>
    %1 = math.tanh %0 : vector<128x16xf32>
    %cst = arith.constant 1.000000e+00 : f32
    %2 = vector.broadcast %cst : f32 to vector<128x16xf32>
    %3 = arith.truncf %2 : vector<128x16xf32> to vector<128x16xbf16>
    %c0_1 = arith.constant 0 : index
    %c0_2 = arith.constant 0 : index
    %4 = vector.load %arg4[%c0_1, %c0_2] : memref<128x64xbf16, #tpu.memory_space<vmem>>, vector<128x16xbf16>
    tpu.vector_store %arg4[%c0_1, %c0_2], %3 {strides = array<i32>} : memref<128x64xbf16, #tpu.memory_space<vmem>>, vector<128x16xbf16>,
    %5 = arith.truncf %1 : vector<128x16xf32> to vector<128x16xbf16>
    %c0_3 = arith.constant 0 : index
    %c16 = arith.constant 16 : index
    %6 = vector.load %arg4[%c0_3, %c16] : memref<128x64xbf16, #tpu.memory_space<vmem>>, vector<128x16xbf16>
    tpu.vector_store %arg4[%c0_3, %c16], %5 {strides = array<i32>} : memref<128x64xbf16, #tpu.memory_space<vmem>>, vector<128x16xbf16>,
    %cst_4 = arith.constant 2.000000e+00 : f32
    %7 = vector.broadcast %cst_4 : f32 to vector<128x16xf32>
    %8 = arith.mulf %7, %1 : vector<128x16xf32>
    %cst_5 = arith.constant 1.000000e+00 : f32
    %9 = vector.broadcast %cst_5 : f32 to vector<128x16xf32>
    %10 = arith.mulf %8, %1 : vector<128x16xf32>
    %11 = arith.subf %10, %9 : vector<128x16xf32>
    %12 = arith.truncf %11 : vector<128x16xf32> to vector<128x16xbf16>
    %c0_6 = arith.constant 0 : index
    %c32 = arith.constant 32 : index
    %13 = vector.load %arg4[%c0_6, %c32] : memref<128x64xbf16, #tpu.memory_space<vmem>>, vector<128x16xbf16>
    tpu.vector_store %arg4[%c0_6, %c32], %12 {strides = array<i32>} : memref<128x64xbf16, #tpu.memory_space<vmem>>, vector<128x16xbf16>,
    %14 = arith.mulf %8, %11 : vector<128x16xf32>
    %15 = arith.subf %14, %1 : vector<128x16xf32>
    %16 = arith.truncf %15 : vector<128x16xf32> to vector<128x16xbf16>
    %c0_7 = arith.constant 0 : index
    %c48 = arith.constant 48 : index
    %17 = vector.load %arg4[%c0_7, %c48] : memref<128x64xbf16, #tpu.memory_space<vmem>>, vector<128x16xbf16>
    tpu.vector_store %arg4[%c0_7, %c48], %16 {strides = array<i32>} : memref<128x64xbf16, #tpu.memory_space<vmem>>, vector<128x16xbf16>,
    %c0_8 = arith.constant 0 : index
    %c0_9 = arith.constant 0 : index
    %18 = vector.load %arg4[%c0_8, %c0_9] : memref<128x64xbf16, #tpu.memory_space<vmem>>, vector<128x64xbf16>
    %c0_10 = arith.constant 0 : index
    %c0_11 = arith.constant 0 : index
    %19 = vector.load %arg2[%c0_10, %c0_11] : memref<64x32xbf16, #tpu.memory_space<vmem>>, vector<64x32xbf16>
    %cst_12 = arith.constant dense<0.000000e+00> : vector<128x32xf32>
    %20 = tpu.matmul %18, %19, %cst_12 {dimension_numbers = #tpu.dot_dimension_numbers<[1], [0], [0], [1], [0, 0, 1, 1], [], []>} : vector<128x64xbf16>, vector<64x32xbf16>, vector<128x32xf32> -> vector<128x32xf32>
    %c0_13 = arith.constant 0 : index
    %c0_14 = arith.constant 0 : index
    %21 = vector.load %arg3[%c0_13, %c0_14] : memref<128x32xf32, #tpu.memory_space<vmem>>, vector<128x32xf32>
    tpu.vector_store %arg3[%c0_13, %c0_14], %20 {strides = array<i32>} : memref<128x32xf32, #tpu.memory_space<vmem>>, vector<128x32xf32>,
    return
  }
  func.func @transform_0(%arg0: i32) -> (i32, i32) {
    %c0_i32 = arith.constant 0 : i32
    %c0_i32_0 = arith.constant 0 : i32
    return %arg0, %c0_i32 : i32, i32
  }
  func.func @transform_1(%arg0: i32) -> (i32, i32) {
    %c0_i32 = arith.constant 0 : i32
    %c0_i32_0 = arith.constant 0 : i32
    %c0_i32_1 = arith.constant 0 : i32
    return %c0_i32, %c0_i32_0 : i32, i32
  }
  func.func @transform_2(%arg0: i32) -> (i32, i32) {
    %c0_i32 = arith.constant 0 : i32
    %c0_i32_0 = arith.constant 0 : i32
    return %arg0, %c0_i32 : i32, i32
  }
}

module attributes {stable_mosaic.version = 11 : i64} {
  func.func @_cheby_kan_kernel(%arg0: i32, %arg1: memref<128x16xf32, #tpu.memory_space<vmem>>, %arg2: memref<64x32xbf16, #tpu.memory_space<vmem>>, %arg3: memref<128x32xf32, #tpu.memory_space<vmem>>, %arg4: memref<128x64xbf16, #tpu.memory_space<vmem>>) attributes {dimension_semantics = [#tpu.dimension_semantics<parallel>], iteration_bounds = array<i64: 1>, scalar_prefetch = 0 : i64, scratch_operands = 1 : i64, tpu.core_type = #tpu.core_type<tc>, window_params = [{transform_indices = @transform_0, window_bounds = array<i64: 128, 16>}, {pipeline_mode = #tpu.pipeline_mode<synchronous>, transform_indices = @transform_1, window_bounds = array<i64: 64, 32>}, {transform_indices = @transform_2, window_bounds = array<i64: 128, 32>}]} {
    %c0 = arith.constant 0 : index
    %c0_0 = arith.constant 0 : index
    %0 = vector.load %arg1[%c0, %c0_0] : memref<128x16xf32, #tpu.memory_space<vmem>>, vector<128x16xf32>
    %1 = math.tanh %0 : vector<128x16xf32>
    %cst = arith.constant 1.000000e+00 : f32
    %2 = vector.broadcast %cst : f32 to vector<128x16xf32>
    %3 = arith.truncf %2 : vector<128x16xf32> to vector<128x16xbf16>
    %c0_1 = arith.constant 0 : index
    %c0_2 = arith.constant 0 : index
    %4 = vector.load %arg4[%c0_1, %c0_2] : memref<128x64xbf16, #tpu.memory_space<vmem>>, vector<128x16xbf16>
    tpu.vector_store %arg4[%c0_1, %c0_2], %3 {strides = array<i32>} : memref<128x64xbf16, #tpu.memory_space<vmem>>, vector<128x16xbf16>,
    %5 = arith.truncf %1 : vector<128x16xf32> to vector<128x16xbf16>
    %c0_3 = arith.constant 0 : index
    %c16 = arith.constant 16 : index
    %6 = vector.load %arg4[%c0_3, %c16] : memref<128x64xbf16, #tpu.memory_space<vmem>>, vector<128x16xbf16>
    tpu.vector_store %arg4[%c0_3, %c16], %5 {strides = array<i32>} : memref<128x64xbf16, #tpu.memory_space<vmem>>, vector<128x16xbf16>,
    %cst_4 = arith.constant 2.000000e+00 : f32
    %7 = vector.broadcast %cst_4 : f32 to vector<128x16xf32>
    %8 = arith.mulf %7, %1 : vector<128x16xf32>
    %cst_5 = arith.constant 1.000000e+00 : f32
    %9 = vector.broadcast %cst_5 : f32 to vector<128x16xf32>
    %10 = arith.mulf %8, %1 : vector<128x16xf32>
    %11 = arith.subf %10, %9 : vector<128x16xf32>
    %12 = arith.truncf %11 : vector<128x16xf32> to vector<128x16xbf16>
    %c0_6 = arith.constant 0 : index
    %c32 = arith.constant 32 : index
    %13 = vector.load %arg4[%c0_6, %c32] : memref<128x64xbf16, #tpu.memory_space<vmem>>, vector<128x16xbf16>
    tpu.vector_store %arg4[%c0_6, %c32], %12 {strides = array<i32>} : memref<128x64xbf16, #tpu.memory_space<vmem>>, vector<128x16xbf16>,
    %14 = arith.mulf %8, %11 : vector<128x16xf32>
    %15 = arith.subf %14, %1 : vector<128x16xf32>
    %16 = arith.truncf %15 : vector<128x16xf32> to vector<128x16xbf16>
    %c0_7 = arith.constant 0 : index
    %c48 = arith.constant 48 : index
    %17 = vector.load %arg4[%c0_7, %c48] : memref<128x64xbf16, #tpu.memory_space<vmem>>, vector<128x16xbf16>
    tpu.vector_store %arg4[%c0_7, %c48], %16 {strides = array<i32>} : memref<128x64xbf16, #tpu.memory_space<vmem>>, vector<128x16xbf16>,
    %c0_8 = arith.constant 0 : index
    %c0_9 = arith.constant 0 : index
    %18 = vector.load %arg4[%c0_8, %c0_9] : memref<128x64xbf16, #tpu.memory_space<vmem>>, vector<128x64xbf16>
    %c0_10 = arith.constant 0 : index
    %c0_11 = arith.constant 0 : index
    %19 = vector.load %arg2[%c0_10, %c0_11] : memref<64x32xbf16, #tpu.memory_space<vmem>>, vector<64x32xbf16>
    %cst_12 = arith.constant dense<0.000000e+00> : vector<128x32xf32>
    %20 = tpu.matmul %18, %19, %cst_12 {dimension_numbers = #tpu.dot_dimension_numbers<[1], [0], [0], [1], [0, 0, 1, 1], [], []>} : vector<128x64xbf16>, vector<64x32xbf16>, vector<128x32xf32> -> vector<128x32xf32>
    %c0_13 = arith.constant 0 : index
    %c0_14 = arith.constant 0 : index
    %21 = vector.load %arg3[%c0_13, %c0_14] : memref<128x32xf32, #tpu.memory_space<vmem>>, vector<128x32xf32>
    tpu.vector_store %arg3[%c0_13, %c0_14], %20 {strides = array<i32>} : memref<128x32xf32, #tpu.memory_space<vmem>>, vector<128x32xf32>,
    return
  }
  func.func @transform_0(%arg0: i32) -> (i32, i32) {
    %c0_i32 = arith.constant 0 : i32
    %c0_i32_0 = arith.constant 0 : i32
    return %arg0, %c0_i32 : i32, i32
  }
  func.func @transform_1(%arg0: i32) -> (i32, i32) {
    %c0_i32 = arith.constant 0 : i32
    %c0_i32_0 = arith.constant 0 : i32
    %c0_i32_1 = arith.constant 0 : i32
    return %c0_i32, %c0_i32_0 : i32, i32
  }
  func.func @transform_2(%arg0: i32) -> (i32, i32) {
    %c0_i32 = arith.constant 0 : i32
    %c0_i32_0 = arith.constant 0 : i32
    return %arg0, %c0_i32 : i32, i32
  }
}

</mosaic_0001>

<bundles_post_ra>
// kernel: tpu_custom_call.1
= control target key start
LH: loop header
LB: loop body
LE: loop exit
PB: predicated region body
PF: predicated region fallthrough
CT: control target
= control target key end

     0   :  { %s748_s17 = smov 16   ;;  %s749_s18 = smov 32   ;;  %vm45_vm0 = vcmask 125952   ;;  %vm142_vm1 = vcmask 257152   ;;  %vm287_vm2 = vcmask 388352   ;;  %vm416_vm3 = vcmask 519552   ;;  %s1032_s0 = inlined_call_operand.vmem [shape: f32[128,16], index: 0, kind: input, shape index: {}]   ;;  %s1033_s1 = inlined_call_operand.vmem [shape: bf16[64,32], index: 1, kind: input, shape index: {}]   ;;  %s1034_s2 = inlined_call_operand.vmem [shape: f32[128,32], index: 2, kind: output, shape index: {}]  }
   0x1   :  { %v25_v0 = vld [vmem:[%s1032_s0 + $0x60] sm:$0xff]  ;;  %v26_v2 = vld [vmem:[%s1032_s0 + $0x68] sm:$0xff]  ;;  %s750_s27 = smov 48   ;;  %vm521_vm4 = vcmask 523264   ;;  %vm595_vm5 = vcmask 261120  }
   0x2   :  { %v21_v1 = vld [vmem:[%s1032_s0 + $0x40] sm:$0xff]  ;;  %716 = vtanh.f32 %v25_v0  ;;  %v22_v3 = vld [vmem:[%s1032_s0 + $0x48] sm:$0xff] }
   0x3   :  { %718 = vtanh.f32 %v21_v1  ;;  %v13_v31 = vld [vmem:[%s1032_s0] sm:$0xff]  ;;  %v14_v34 = vld [vmem:[%s1032_s0 + $0x8] sm:$0xff] }
   0x4   :  { %720 = vtanh.f32 %v26_v2  ;;  %v17_v40 = vld [vmem:[%s1032_s0 + $0x20] sm:$0xff]  ;;  %v18_v41 = vld [vmem:[%s1032_s0 + $0x28] sm:$0xff] }
   0x5   :  { %722 = vtanh.f32 %v22_v3 }
   0x6   :  { %724 = vtanh.f32 %v13_v31 }
   0x7   :  { %726 = vtanh.f32 %v14_v34 }
   0x8   :  { %v717_v4 = vpop.eup %716  ;;  %728 = vtanh.f32 %v17_v40 }
   0x9   :  { %v719_v5 = vpop.eup %718  ;;  %v74_v6 = vpack.c.bf16 %v717_v4, %v717_v4  ;;  %v171_v12 = vmul.f32 2.0, %v717_v4  ;;  %730 = vtanh.f32 %v18_v41 }
   0xa   :  { %v721_v7 = vpop.eup %720  ;;  %v70_v8 = vpack.c.bf16 %v719_v5, %v719_v5  ;;  %v167_v9 = vmul.f32 2.0, %v719_v5 }
   0xb   :  { %v723_v10 = vpop.eup %722  ;;  %118 = vrot.lane.b32.xlu1 %v74_v6, %s748_s17  ;;  %v172_v11 = vmul.f32 2.0, %v721_v7  ;;  %v75_v16 = vpack.c.bf16 %v721_v7, %v721_v7  ;;  %v187_v19 = vmul.f32 %v717_v4, %v171_v12 }
   0xc   :  { %110 = vrot.lane.b32.xlu0 %v70_v8, %s748_s17  ;;  %v183_v13 = vmul.f32 %v719_v5, %v167_v9  ;;  %v168_v14 = vmul.f32 2.0, %v723_v10  ;;  %v71_v18 = vpack.c.bf16 %v723_v10, %v723_v10  ;;  %v725_v42 = vpop.eup %724 }
   0xd   :  { %v188_v17 = vmul.f32 %v721_v7, %v172_v11  ;;  %v628_v23 = vadd.f32 -1.0, %v187_v19  ;;  %v159_v44 = vmul.f32 2.0, %v725_v42  ;;  %v727_v45 = vpop.eup %726  ;;  %v62_v49 = vpack.c.bf16 %v725_v42, %v725_v42 }
   0xe   :  { %v624_v15 = vadd.f32 -1.0, %v183_v13  ;;  %v184_v21 = vmul.f32 %v723_v10, %v168_v14  ;;  %v63_v47 = vpack.c.bf16 %v727_v45, %v727_v45  ;;  %v729_v50 = vpop.eup %728  ;;  %v160_v55 = vmul.f32 2.0, %v727_v45 }
   0xf   :  { %v629_v22 = vadd.f32 -1.0, %v188_v17  ;;  %v316_v28 = vmul.f32 %v628_v23, %v171_v12  ;;  %v219_v29 = vpack.c.bf16 %v628_v23, %v628_v23  ;;  %v175_v48 = vmul.f32 %v725_v42, %v159_v44  ;;  %v731_v51 = vpop.eup %730  ;;  %v28_v17 = vld [vmem:[%s1032_s0 + $0x78] sm:$0xff] }
  0x10   :  { %v215_v20 = vpack.c.bf16 %v624_v15, %v624_v15  ;;  %v625_v24 = vadd.f32 -1.0, %v184_v21  ;;  %v312_v25 = vmul.f32 %v624_v15, %v167_v9  ;;  %v164_v53 = vmul.f32 2.0, %v731_v51 }
  0x11   :  { %v220_v27 = vpack.c.bf16 %v629_v22, %v629_v22  ;;  %v332_v33 = vsub.f32 %v316_v28, %v717_v4  ;;  %v317_v37 = vmul.f32 %v629_v22, %v172_v11  ;;  %v616_v52 = vadd.f32 -1.0, %v175_v48 }
  0x12   :  { %255 = vrot.lane.b32.xlu2 %v215_v20, %s749_s18  ;;  %v216_v26 = vpack.c.bf16 %v625_v24, %v625_v24  ;;  %v313_v30 = vmul.f32 %v625_v24, %v168_v14  ;;  %v328_v32 = vsub.f32 %v312_v25, %v719_v5  ;;  %v163_v54 = vmul.f32 2.0, %v729_v50 }
  0x13   :  { %120 = vrot.lane.b32.xlu1 %v75_v16, %s748_s17  ;;  %v348_v38 = vpack.c.bf16 %v332_v33, %v332_v33  ;;  %v333_v43 = vsub.f32 %v317_v37, %v721_v7  ;;  %v66_v56 = vpack.c.bf16 %v729_v50, %v729_v50  ;;  %v207_v57 = vpack.c.bf16 %v616_v52, %v616_v52  ;;  %v23_v7 = vld [vmem:[%s1032_s0 + $0x50] sm:$0xff] }
  0x14   :  { %112 = vrot.lane.b32.xlu0 %v71_v18, %s748_s17  ;;  %v329_v35 = vsub.f32 %v313_v30, %v723_v10  ;;  %v344_v36 = vpack.c.bf16 %v328_v32, %v328_v32  ;;  %v180_v58 = vmul.f32 %v731_v51, %v164_v53  ;;  %v67_v59 = vpack.c.bf16 %v731_v51, %v731_v51  ;;  %v24_v10 = vld [vmem:[%s1032_s0 + $0x58] sm:$0xff]  ;;  %v27_v16 = vld [vmem:[%s1032_s0 + $0x70] sm:$0xff] }
  0x15   :  { %v349_v46 = vpack.c.bf16 %v333_v43, %v333_v43  ;;  %v179_v60 = vmul.f32 %v729_v50, %v163_v54  ;;  %v176_v61 = vmul.f32 %v727_v45, %v160_v55  ;;  %v304_v2 = vmul.f32 %v616_v52, %v159_v44 }
  0x16   :  { %v345_v39 = vpack.c.bf16 %v329_v35, %v329_v35  ;;  %v621_v62 = vadd.f32 -1.0, %v180_v58  ;;  %732 = vtanh.f32 %v23_v7  ;;  %v751_v52 = vmov 1065369472   ;;  %v20_v58 = vld [vmem:[%s1032_s0 + $0x38] sm:$0xff] }
  0x17   :  { %v620_v63 = vadd.f32 -1.0, %v179_v60  ;;  %v617_v0 = vadd.f32 -1.0, %v176_v61  ;;  %v320_v8 = vsub.f32 %v304_v2, %v725_v42  ;;  %734 = vtanh.f32 %v24_v10  ;;  %58 = vst.msk [vmem:[#allocation2 + $0x30] sm:$0xf] %vm45_vm0, %v751_v52 }
  0x18   :  { %v212_v3 = vpack.c.bf16 %v621_v62, %v621_v62  ;;  %v309_v13 = vmul.f32 %v621_v62, %v164_v53  ;;  %736 = vtanh.f32 %v27_v16  ;;  %46 = vst.msk [vmem:[#allocation2] sm:$0xf] %vm45_vm0, %v751_v52 }
  0x19   :  { %v208_v1 = vpack.c.bf16 %v617_v0, %v617_v0  ;;  %v308_v4 = vmul.f32 %v620_v63, %v163_v54  ;;  %v211_v5 = vpack.c.bf16 %v620_v63, %v620_v63  ;;  %v305_v6 = vmul.f32 %v617_v0, %v160_v55  ;;  %47 = vst.msk [vmem:[#allocation2 + $0x4] sm:$0xf] %vm45_vm0, %v751_v52 }
  0x1a   :  { %257 = vrot.lane.b32.xlu2 %v216_v26, %s749_s18  ;;  %v336_v12 = vpack.c.bf16 %v320_v8, %v320_v8  ;;  %v325_v19 = vsub.f32 %v309_v13, %v731_v51  ;;  %738 = vtanh.f32 %v28_v17  ;;  %48 = vst.msk [vmem:[#allocation2 + $0x8] sm:$0xf] %vm45_vm0, %v751_v52  ;;  %v699_v13 = vld [vmem:[%s1033_s1 + $0x18] sm:$0xff]  ;;  %v698_v17 = vld [vmem:[%s1033_s1 + $0x10] sm:$0xff] }
  0x1b   :  { %265 = vrot.lane.b32.xlu1 %v220_v27, %s749_s18  ;;  %v324_v9 = vsub.f32 %v308_v4, %v729_v50  ;;  %v321_v11 = vsub.f32 %v305_v6, %v727_v45  ;;  %v16_v50 = vld [vmem:[%s1032_s0 + $0x18] sm:$0xff]  ;;  %49 = vst.msk [vmem:[#allocation2 + $0xc] sm:$0xf] %vm45_vm0, %v751_v52  ;;  %701 = vmatpush.bf16.msra.mxu2 %v699_v13 }
  0x1c   :  { %263 = vrot.lane.b32.xlu0 %v219_v29, %s749_s18  ;;  %v733_v18 = vpop.eup %732  ;;  %v341_v22 = vpack.c.bf16 %v325_v19, %v325_v19  ;;  %50 = vst.msk [vmem:[#allocation2 + $0x10] sm:$0xf] %vm45_vm0, %v751_v52  ;;  %702 = vmatpush.bf16.msra.mxu3 %v699_v13 }
  0x1d   :  { %v340_v14 = vpack.c.bf16 %v324_v9, %v324_v9  ;;  %v337_v15 = vpack.c.bf16 %v321_v11, %v321_v11  ;;  %v169_v20 = vmul.f32 2.0, %v733_v18  ;;  %v735_v21 = vpop.eup %734  ;;  %v72_v25 = vpack.c.bf16 %v733_v18, %v733_v18  ;;  %51 = vst.msk [vmem:[#allocation2 + $0x14] sm:$0xf] %vm45_vm0, %v751_v52  ;;  %550 = vmatpush.bf16.msra.mxu0 %v699_v13 }
  0x1e   :  { %v73_v23 = vpack.c.bf16 %v735_v21, %v735_v21  ;;  %v737_v26 = vpop.eup %736  ;;  %v170_v31 = vmul.f32 2.0, %v735_v21  ;;  %52 = vst.msk [vmem:[#allocation2 + $0x18] sm:$0xf] %vm45_vm0, %v751_v52  ;;  %700 = vmatpush.bf16.msra.mxu1 %v699_v13 }
  0x1f   :  { %v185_v24 = vmul.f32 %v733_v18, %v169_v20  ;;  %v173_v30 = vmul.f32 2.0, %v737_v26  ;;  %v76_v32 = vpack.c.bf16 %v737_v26, %v737_v26  ;;  %53 = vst.msk [vmem:[#allocation2 + $0x1c] sm:$0xf] %vm45_vm0, %v751_v52  ;;  %704 = vmatpush.bf16.msra.mxu2 %v698_v17 }
  0x20   :  { %v739_v27 = vpop.eup %738  ;;  %v186_v37 = vmul.f32 %v735_v21, %v170_v31  ;;  %54 = vst.msk [vmem:[#allocation2 + $0x20] sm:$0xf] %vm45_vm0, %v751_v52  ;;  %705 = vmatpush.bf16.msra.mxu3 %v698_v17 }
  0x21   :  { %v626_v28 = vadd.f32 -1.0, %v185_v24  ;;  %v174_v29 = vmul.f32 2.0, %v739_v27  ;;  %v77_v35 = vpack.c.bf16 %v739_v27, %v739_v27  ;;  %55 = vst.msk [vmem:[#allocation2 + $0x24] sm:$0xf] %vm45_vm0, %v751_v52  ;;  %551 = vmatpush.bf16.msra.mxu0 %v698_v17 }
  0x22   :  { %384 = vrot.lane.b32.xlu2 %v344_v36, %s750_s27  ;;  %v189_v36 = vmul.f32 %v737_v26, %v173_v30  ;;  %v627_v40 = vadd.f32 -1.0, %v186_v37  ;;  %56 = vst.msk [vmem:[#allocation2 + $0x28] sm:$0xf] %vm45_vm0, %v751_v52  ;;  %703 = vmatpush.bf16.msra.mxu1 %v698_v17 }
  0x23   :  { %392 = vrot.lane.b32.xlu1 %v348_v38, %s750_s27  ;;  %v217_v33 = vpack.c.bf16 %v626_v28, %v626_v28  ;;  %v190_v34 = vmul.f32 %v739_v27, %v174_v29  ;;  %v314_v42 = vmul.f32 %v626_v28, %v169_v20  ;;  %57 = vst.msk [vmem:[#allocation2 + $0x2c] sm:$0xf] %vm45_vm0, %v751_v52 }
  0x24   :  { %386 = vrot.lane.b32.xlu0 %v345_v39, %s750_s27  ;;  %v630_v39 = vadd.f32 -1.0, %v189_v36  ;;  %v218_v41 = vpack.c.bf16 %v627_v40, %v627_v40  ;;  %59 = vst.msk [vmem:[#allocation2 + $0x34] sm:$0xf] %vm45_vm0, %v751_v52 }
  0x25   :  { %v631_v38 = vadd.f32 -1.0, %v190_v34  ;;  %v330_v48 = vsub.f32 %v314_v42, %v733_v18  ;;  %60 = vst.msk [vmem:[#allocation2 + $0x38] sm:$0xf] %vm45_vm0, %v751_v52 }
  0x26   :  { %v318_v44 = vmul.f32 %v630_v39, %v173_v30  ;;  %v221_v45 = vpack.c.bf16 %v630_v39, %v630_v39  ;;  %61 = vst.msk [vmem:[#allocation2 + $0x3c] sm:$0xf] %vm45_vm0, %v751_v52 }
  0x27   :  { %v222_v43 = vpack.c.bf16 %v631_v38, %v631_v38  ;;  %v346_v53 = vpack.c.bf16 %v330_v48, %v330_v48  ;;  %v319_v54 = vmul.f32 %v631_v38, %v174_v29  ;;  %v696_v29 = vld [vmem:[%s1033_s1] sm:$0xff] }
  0x29   :  { %v335_v60 = vsub.f32 %v319_v54, %v739_v27 }
  0x2a   :  { %394 = vrot.lane.b32.xlu2 %v349_v46, %s750_s27  ;;  %v315_v46 = vmul.f32 %v627_v40, %v170_v31 }
  0x2b   :  { %96 = vrot.lane.b32.xlu1 %v63_v47, %s748_s17  ;;  %v15_v47 = vld [vmem:[%s1032_s0 + $0x10] sm:$0xff]  ;;  %v351_v63 = vpack.c.bf16 %v335_v60, %v335_v60 }
  0x2c   :  { %94 = vrot.lane.b32.xlu0 %v62_v49, %s748_s17  ;;  %v334_v49 = vsub.f32 %v318_v44, %v737_v26  ;;  %v331_v51 = vsub.f32 %v315_v46, %v735_v21  ;;  %740 = vtanh.f32 %v15_v47  ;;  %v697_v26 = vld [vmem:[%s1033_s1 + $0x8] sm:$0xff] }
  0x2d   :  { %742 = vtanh.f32 %v16_v50  ;;  %707 = vmatpush.bf16.msra.mxu2 %v697_v26  ;;  %708 = vmatpush.bf16.msra.mxu3 %v697_v26 }
  0x2e   :  { %v350_v55 = vpack.c.bf16 %v334_v49, %v334_v49  ;;  %552 = vmatpush.bf16.msra.mxu0 %v697_v26  ;;  %706 = vmatpush.bf16.msra.mxu1 %v697_v26 }
  0x31   :  { %710 = vmatpush.bf16.msra.mxu2 %v696_v29  ;;  %711 = vmatpush.bf16.msra.mxu3 %v696_v29 }
  0x32   :  { %102 = vrot.lane.b32.xlu2 %v66_v56, %s748_s17  ;;  %v347_v56 = vpack.c.bf16 %v331_v51, %v331_v51  ;;  %553 = vmatpush.bf16.msra.mxu0 %v696_v29 }
  0x33   :  { %239 = vrot.lane.b32.xlu1 %v207_v57, %s749_s18  ;;  %v19_v57 = vld [vmem:[%s1032_s0 + $0x30] sm:$0xff]  ;;  %709 = vmatpush.bf16.msra.mxu1 %v696_v29 }
  0x34   :  { %104 = vrot.lane.b32.xlu0 %v67_v59, %s748_s17  ;;  %v852_v59 = vpop.eup %740  ;;  %744 = vtanh.f32 %v19_v57 }
  0x35   :  { %v161_v61 = vmul.f32 2.0, %v852_v59  ;;  %v859_v62 = vpop.eup %742  ;;  %746 = vtanh.f32 %v20_v58  ;;  %v64_v2 = vpack.c.bf16 %v852_v59, %v852_v59 }
  0x36   :  { %v65_v0 = vpack.c.bf16 %v859_v62, %v859_v62  ;;  %v162_v9 = vmul.f32 2.0, %v859_v62 }
  0x38   :  { %v178_v16 = vmul.f32 %v859_v62, %v162_v9 }
  0x3a   :  { %241 = vrot.lane.b32.xlu2 %v208_v1, %s749_s18  ;;  %v177_v1 = vmul.f32 %v852_v59, %v161_v61  ;;  %v619_v20 = vadd.f32 -1.0, %v178_v16 }
  0x3b   :  { %249 = vrot.lane.b32.xlu1 %v212_v3, %s749_s18  ;;  %v745_v3 = vpop.eup %744 }
  0x3c   :  { %247 = vrot.lane.b32.xlu0 %v211_v5, %s749_s18  ;;  %v873_v4 = vpop.eup %746  ;;  %v618_v5 = vadd.f32 -1.0, %v177_v1  ;;  %v165_v7 = vmul.f32 2.0, %v745_v3  ;;  %v68_v10 = vpack.c.bf16 %v745_v3, %v745_v3  ;;  %v307_v28 = vmul.f32 %v619_v20, %v162_v9 }
  0x3d   :  { %v166_v6 = vmul.f32 2.0, %v873_v4 }
  0x3e   :  { %v209_v11 = vpack.c.bf16 %v618_v5, %v618_v5 }
  0x42   :  { %368 = vrot.lane.b32.xlu2 %v336_v12, %s750_s27  ;;  %v182_v12 = vmul.f32 %v873_v4, %v166_v6 }
  0x43   :  { %376 = vrot.lane.b32.xlu1 %v340_v14, %s750_s27  ;;  %v69_v14 = vpack.c.bf16 %v873_v4, %v873_v4 }
  0x44   :  { %370 = vrot.lane.b32.xlu0 %v337_v15, %s750_s27  ;;  %v181_v15 = vmul.f32 %v745_v3, %v165_v7  ;;  %v623_v18 = vadd.f32 -1.0, %v182_v12 }
  0x46   :  { %v622_v19 = vadd.f32 -1.0, %v181_v15  ;;  %v214_v24 = vpack.c.bf16 %v623_v18, %v623_v18  ;;  %v311_v37 = vmul.f32 %v623_v18, %v166_v6 }
  0x48   :  { %v213_v27 = vpack.c.bf16 %v622_v19, %v622_v19  ;;  %v327_v40 = vsub.f32 %v311_v37, %v873_v4 }
  0x4a   :  { %378 = vrot.lane.b32.xlu2 %v341_v22, %s750_s27  ;;  %v210_v22 = vpack.c.bf16 %v619_v20, %v619_v20  ;;  %v343_v44 = vpack.c.bf16 %v327_v40, %v327_v40 }
  0x4b   :  { %116 = vrot.lane.b32.xlu1 %v73_v23, %s748_s17  ;;  %v306_v23 = vmul.f32 %v618_v5, %v161_v61 }
  0x4c   :  { %114 = vrot.lane.b32.xlu0 %v72_v25, %s748_s17  ;;  %v310_v25 = vmul.f32 %v622_v19, %v165_v7 }
  0x4d   :  { %v322_v30 = vsub.f32 %v306_v23, %v852_v59 }
  0x4e   :  { %v326_v31 = vsub.f32 %v310_v25, %v745_v3 }
  0x4f   :  { %v338_v36 = vpack.c.bf16 %v322_v30, %v322_v30 }
  0x50   :  { %v342_v38 = vpack.c.bf16 %v326_v31, %v326_v31 }
  0x52   :  { %122 = vrot.lane.b32.xlu2 %v76_v32, %s748_s17  ;;  %v323_v32 = vsub.f32 %v307_v28, %v859_v62 }
  0x53   :  { %259 = vrot.lane.b32.xlu1 %v217_v33, %s749_s18 }
  0x54   :  { %124 = vrot.lane.b32.xlu0 %v77_v35, %s748_s17  ;;  %v339_v39 = vpack.c.bf16 %v323_v32, %v323_v32 }
  0x5a   :  { %261 = vrot.lane.b32.xlu2 %v218_v41, %s749_s18 }
  0x5b   :  { %269 = vrot.lane.b32.xlu1 %v222_v43, %s749_s18 }
  0x5c   :  { %267 = vrot.lane.b32.xlu0 %v221_v45, %s749_s18 }
  0x62   :  { %388 = vrot.lane.b32.xlu2 %v346_v53, %s750_s27 }
  0x63   :  { %396 = vrot.lane.b32.xlu1 %v350_v55, %s750_s27 }
  0x64   :  { %390 = vrot.lane.b32.xlu0 %v347_v56, %s750_s27 }
  0x6a   :  { %398 = vrot.lane.b32.xlu2 %v351_v63, %s750_s27 }
  0x6b   :  { %100 = vrot.lane.b32.xlu1 %v65_v0, %s748_s17 }
  0x6c   :  { %98 = vrot.lane.b32.xlu0 %v64_v2, %s748_s17  ;;  %v256_v8 = vpop.permute.xlu2 %255 }
  0x72   :  { %106 = vrot.lane.b32.xlu2 %v68_v10, %s748_s17 }
  0x73   :  { %243 = vrot.lane.b32.xlu1 %v209_v11, %s749_s18 }
  0x74   :  { %108 = vrot.lane.b32.xlu0 %v69_v14, %s748_s17  ;;  %v258_v21 = vpop.permute.xlu2 %257 }
  0x7a   :  { %245 = vrot.lane.b32.xlu2 %v210_v22, %s749_s18 }
  0x7b   :  { %253 = vrot.lane.b32.xlu1 %v214_v24, %s749_s18 }
  0x7c   :  { %251 = vrot.lane.b32.xlu0 %v213_v27, %s749_s18  ;;  %v385_v33 = vpop.permute.xlu2 %384 }
  0x7d   :  { %v119_v34 = vpop.permute.xlu1 %118 }
  0x7e   :  { %155 = vst.msk [vmem:[#allocation2 + $0x30] sm:$0xf] %vm142_vm1, %v119_v34  ;;  %v111_v35 = vpop.permute.xlu0 %110 }
  0x7f   :  { %151 = vst.msk [vmem:[#allocation2 + $0x20] sm:$0xf] %vm142_vm1, %v111_v35 }
  0x80   :  { %296 = vst.msk [vmem:[#allocation2 + $0x20] sm:$0xf] %vm287_vm2, %v256_v8 }
  0x81   :  { %425 = vst.msk [vmem:[#allocation2 + $0x20] sm:$0xf] %vm416_vm3, %v385_v33 }
  0x82   :  { %372 = vrot.lane.b32.xlu2 %v338_v36, %s750_s27 }
  0x83   :  { %380 = vrot.lane.b32.xlu1 %v342_v38, %s750_s27 }
  0x84   :  { %374 = vrot.lane.b32.xlu0 %v339_v39, %s750_s27  ;;  %v395_v41 = vpop.permute.xlu2 %394 }
  0x85   :  { %v121_v42 = vpop.permute.xlu1 %120 }
  0x86   :  { %156 = vst.msk [vmem:[#allocation2 + $0x34] sm:$0xf] %vm142_vm1, %v121_v42  ;;  %v113_v43 = vpop.permute.xlu0 %112 }
  0x87   :  { %152 = vst.msk [vmem:[#allocation2 + $0x24] sm:$0xf] %vm142_vm1, %v113_v43 }
  0x88   :  { %297 = vst.msk [vmem:[#allocation2 + $0x24] sm:$0xf] %vm287_vm2, %v258_v21 }
  0x8a   :  { %382 = vrot.lane.b32.xlu2 %v343_v44, %s750_s27 }
  0x8c   :  { %v103_v45 = vpop.permute.xlu2 %102 }
  0x8d   :  { %v266_v46 = vpop.permute.xlu1 %265  ;;  %147 = vst.msk [vmem:[#allocation2 + $0x10] sm:$0xf] %vm142_vm1, %v103_v45 }
  0x8e   :  { %301 = vst.msk [vmem:[#allocation2 + $0x34] sm:$0xf] %vm287_vm2, %v266_v46  ;;  %v264_v47 = vpop.permute.xlu0 %263 }
  0x8f   :  { %300 = vst.msk [vmem:[#allocation2 + $0x30] sm:$0xf] %vm287_vm2, %v264_v47 }
  0x90   :  { %430 = vst.msk [vmem:[#allocation2 + $0x34] sm:$0xf] %vm416_vm3, %v395_v41 }
  0x94   :  { %v242_v48 = vpop.permute.xlu2 %241 }
  0x95   :  { %v393_v49 = vpop.permute.xlu1 %392 }
  0x96   :  { %429 = vst.msk [vmem:[#allocation2 + $0x30] sm:$0xf] %vm416_vm3, %v393_v49  ;;  %v387_v50 = vpop.permute.xlu0 %386 }
  0x97   :  { %426 = vst.msk [vmem:[#allocation2 + $0x24] sm:$0xf] %vm416_vm3, %v387_v50 }
  0x9c   :  { %v369_v51 = vpop.permute.xlu2 %368 }
  0x9d   :  { %v97_v52 = vpop.permute.xlu1 %96  ;;  %v694_v53 = vld [vmem:[#allocation2 + $0x30] sm:$0xff] }
  0x9e   :  { %144 = vst.msk [vmem:[#allocation2 + $0x4] sm:$0xf] %vm142_vm1, %v97_v52  ;;  %v95_v54 = vpop.permute.xlu0 %94  ;;  %v692_v55 = vld [vmem:[#allocation2 + $0x20] sm:$0xff]  ;;  %686 = vmatmul.msk.bf16.vlgmr.msra.gmra.mxu3 %vm521_vm4, %v694_v53 }
  0x9f   :  { %143 = vst.msk [vmem:[#allocation2] sm:$0xf] %vm142_vm1, %v95_v54  ;;  %684 = vmatmul.msk.bf16.vlgmr.msra.gmra.mxu2 %vm521_vm4, %v692_v55 }
  0xa0   :  { %289 = vst.msk [vmem:[#allocation2 + $0x4] sm:$0xf] %vm287_vm2, %v242_v48 }
  0xa4   :  { %v379_v56 = vpop.permute.xlu2 %378 }
  0xa5   :  { %v240_v57 = vpop.permute.xlu1 %239 }
  0xa6   :  { %288 = vst.msk [vmem:[#allocation2] sm:$0xf] %vm287_vm2, %v240_v57  ;;  %v105_v58 = vpop.permute.xlu0 %104 }
  0xa7   :  { %148 = vst.msk [vmem:[#allocation2 + $0x14] sm:$0xf] %vm142_vm1, %v105_v58 }
  0xa8   :  { %417 = vst.msk [vmem:[#allocation2] sm:$0xf] %vm416_vm3, %v369_v51 }
  0xac   :  { %v123_v59 = vpop.permute.xlu2 %122 }
  0xad   :  { %v250_v60 = vpop.permute.xlu1 %249  ;;  %157 = vst.msk [vmem:[#allocation2 + $0x38] sm:$0xf] %vm142_vm1, %v123_v59 }
  0xae   :  { %293 = vst.msk [vmem:[#allocation2 + $0x14] sm:$0xf] %vm287_vm2, %v250_v60  ;;  %v248_v61 = vpop.permute.xlu0 %247 }
  0xaf   :  { %292 = vst.msk [vmem:[#allocation2 + $0x10] sm:$0xf] %vm287_vm2, %v248_v61 }
  0xb0   :  { %422 = vst.msk [vmem:[#allocation2 + $0x14] sm:$0xf] %vm416_vm3, %v379_v56 }
  0xb4   :  { %v262_v62 = vpop.permute.xlu2 %261 }
  0xb5   :  { %v377_v63 = vpop.permute.xlu1 %376 }
  0xb6   :  { %421 = vst.msk [vmem:[#allocation2 + $0x10] sm:$0xf] %vm416_vm3, %v377_v63  ;;  %v371_v0 = vpop.permute.xlu0 %370 }
  0xb7   :  { %418 = vst.msk [vmem:[#allocation2 + $0x4] sm:$0xf] %vm416_vm3, %v371_v0 }
  0xbc   :  { %v389_v1 = vpop.permute.xlu2 %388 }
  0xbd   :  { %v117_v2 = vpop.permute.xlu1 %116  ;;  %v690_v3 = vld [vmem:[#allocation2 + $0x10] sm:$0xff] }
  0xbe   :  { %154 = vst.msk [vmem:[#allocation2 + $0x2c] sm:$0xf] %vm142_vm1, %v117_v2  ;;  %v115_v4 = vpop.permute.xlu0 %114  ;;  %v688_v5 = vld [vmem:[#allocation2] sm:$0xff]  ;;  %682 = vmatmul.msk.bf16.vlgmr.msra.gmra.mxu1 %vm521_vm4, %v690_v3 }
  0xbf   :  { %153 = vst.msk [vmem:[#allocation2 + $0x28] sm:$0xf] %vm142_vm1, %v115_v4  ;;  %680 = vmatmul.msk.bf16.vlgmr.msra.gmra.mxu0 %vm521_vm4, %v688_v5 }
  0xc0   :  { %299 = vst.msk [vmem:[#allocation2 + $0x2c] sm:$0xf] %vm287_vm2, %v262_v62 }
  0xc4   :  { %v399_v6 = vpop.permute.xlu2 %398 }
  0xc5   :  { %v260_v7 = vpop.permute.xlu1 %259 }
  0xc6   :  { %298 = vst.msk [vmem:[#allocation2 + $0x28] sm:$0xf] %vm287_vm2, %v260_v7  ;;  %v125_v8 = vpop.permute.xlu0 %124 }
  0xc7   :  { %158 = vst.msk [vmem:[#allocation2 + $0x3c] sm:$0xf] %vm142_vm1, %v125_v8 }
  0xc8   :  { %427 = vst.msk [vmem:[#allocation2 + $0x28] sm:$0xf] %vm416_vm3, %v389_v1 }
  0xcc   :  { %v107_v9 = vpop.permute.xlu2 %106 }
  0xcd   :  { %v270_v10 = vpop.permute.xlu1 %269  ;;  %149 = vst.msk [vmem:[#allocation2 + $0x18] sm:$0xf] %vm142_vm1, %v107_v9 }
  0xce   :  { %303 = vst.msk [vmem:[#allocation2 + $0x3c] sm:$0xf] %vm287_vm2, %v270_v10  ;;  %v268_v11 = vpop.permute.xlu0 %267 }
  0xcf   :  { %302 = vst.msk [vmem:[#allocation2 + $0x38] sm:$0xf] %vm287_vm2, %v268_v11 }
  0xd0   :  { %432 = vst.msk [vmem:[#allocation2 + $0x3c] sm:$0xf] %vm416_vm3, %v399_v6 }
  0xd4   :  { %v246_v14 = vpop.permute.xlu2 %245 }
  0xd5   :  { %v397_v12 = vpop.permute.xlu1 %396 }
  0xd6   :  { %431 = vst.msk [vmem:[#allocation2 + $0x38] sm:$0xf] %vm416_vm3, %v397_v12  ;;  %v391_v13 = vpop.permute.xlu0 %390 }
  0xd7   :  { %428 = vst.msk [vmem:[#allocation2 + $0x2c] sm:$0xf] %vm416_vm3, %v391_v13 }
  0xdc   :  { %v373_v19 = vpop.permute.xlu2 %372 }
  0xdd   :  { %v101_v15 = vpop.permute.xlu1 %100  ;;  %v695_v16 = vld [vmem:[#allocation2 + $0x38] sm:$0xff] }
  0xde   :  { %146 = vst.msk [vmem:[#allocation2 + $0xc] sm:$0xf] %vm142_vm1, %v101_v15  ;;  %v99_v17 = vpop.permute.xlu0 %98  ;;  %v693_v18 = vld [vmem:[#allocation2 + $0x28] sm:$0xff]  ;;  %687 = vmatmul.msk.bf16.gmra.mxu3 %vm521_vm4, %v695_v16 }
  0xdf   :  { %145 = vst.msk [vmem:[#allocation2 + $0x8] sm:$0xf] %vm142_vm1, %v99_v17  ;;  %685 = vmatmul.msk.bf16.gmra.mxu2 %vm521_vm4, %v693_v18 }
  0xe0   :  { %291 = vst.msk [vmem:[#allocation2 + $0xc] sm:$0xf] %vm287_vm2, %v246_v14 }
  0xe4   :  { %v383_v23 = vpop.permute.xlu2 %382 }
  0xe5   :  { %v244_v20 = vpop.permute.xlu1 %243 }
  0xe6   :  { %290 = vst.msk [vmem:[#allocation2 + $0x8] sm:$0xf] %vm287_vm2, %v244_v20  ;;  %v109_v21 = vpop.permute.xlu0 %108 }
  0xe7   :  { %150 = vst.msk [vmem:[#allocation2 + $0x1c] sm:$0xf] %vm142_vm1, %v109_v21 }
  0xe8   :  { %419 = vst.msk [vmem:[#allocation2 + $0x8] sm:$0xf] %vm416_vm3, %v373_v19 }
  0xed   :  { %v254_v22 = vpop.permute.xlu1 %253 }
  0xee   :  { %295 = vst.msk [vmem:[#allocation2 + $0x1c] sm:$0xf] %vm287_vm2, %v254_v22  ;;  %v252_v24 = vpop.permute.xlu0 %251 }
  0xef   :  { %294 = vst.msk [vmem:[#allocation2 + $0x18] sm:$0xf] %vm287_vm2, %v252_v24 }
  0xf0   :  { %424 = vst.msk [vmem:[#allocation2 + $0x1c] sm:$0xf] %vm416_vm3, %v383_v23 }
  0xf5   :  { %v381_v25 = vpop.permute.xlu1 %380 }
  0xf6   :  { %423 = vst.msk [vmem:[#allocation2 + $0x18] sm:$0xf] %vm416_vm3, %v381_v25  ;;  %v375_v26 = vpop.permute.xlu0 %374 }
  0xf7   :  { %420 = vst.msk [vmem:[#allocation2 + $0xc] sm:$0xf] %vm416_vm3, %v375_v26 }
  0xfd   :  { %v691_v27 = vld [vmem:[#allocation2 + $0x18] sm:$0xff] }
  0xfe   :  { %v689_v28 = vld [vmem:[#allocation2 + $0x8] sm:$0xff]  ;;  %683 = vmatmul.msk.bf16.gmra.mxu1 %vm521_vm4, %v691_v27 }
  0xff   :  { %681 = vmatmul.msk.bf16.gmra.mxu0 %vm521_vm4, %v689_v28 }
 0x121   :  { %v585_v29 = vpop.f32.mrf.mxu3 }
 0x122   :  { %v575_v30 = vpop.f32.mrf.mxu2  ;;  %608 = vst.msk [vmem:[%s1034_s2 + $0x60] sm:$0xff] %vm595_vm5, %v585_v29 }
 0x123   :  { %604 = vst.msk [vmem:[%s1034_s2 + $0x40] sm:$0xff] %vm595_vm5, %v575_v30 }
 0x129   :  { %v587_v31 = vpop.f32.mrf.mxu3 }
 0x12a   :  { %v577_v32 = vpop.f32.mrf.mxu2  ;;  %609 = vst.msk [vmem:[%s1034_s2 + $0x68] sm:$0xff] %vm595_vm5, %v587_v31 }
 0x12b   :  { %605 = vst.msk [vmem:[%s1034_s2 + $0x48] sm:$0xff] %vm595_vm5, %v577_v32 }
 0x13b   :  { %v565_v33 = vpop.f32.mrf.mxu1 }
 0x13c   :  { %v555_v34 = vpop.f32.mrf.mxu0  ;;  %600 = vst.msk [vmem:[%s1034_s2 + $0x20] sm:$0xff] %vm595_vm5, %v565_v33 }
 0x13d   :  { %596 = vst.msk [vmem:[%s1034_s2] sm:$0xff] %vm595_vm5, %v555_v34 }
 0x143   :  { %v567_v35 = vpop.f32.mrf.mxu1 }
 0x144   :  { %v557_v36 = vpop.f32.mrf.mxu0  ;;  %601 = vst.msk [vmem:[%s1034_s2 + $0x28] sm:$0xff] %vm595_vm5, %v567_v35 }
 0x145   :  { %597 = vst.msk [vmem:[%s1034_s2 + $0x8] sm:$0xff] %vm595_vm5, %v557_v36 }
 0x161   :  { %v590_v37 = vpop.f32.mrf.mxu3 }
 0x162   :  { %v580_v38 = vpop.f32.mrf.mxu2  ;;  %610 = vst.msk [vmem:[%s1034_s2 + $0x70] sm:$0xff] %vm595_vm5, %v590_v37 }
 0x163   :  { %606 = vst.msk [vmem:[%s1034_s2 + $0x50] sm:$0xff] %vm595_vm5, %v580_v38 }
 0x169   :  { %v592_v39 = vpop.f32.mrf.mxu3 }
 0x16a   :  { %v582_v40 = vpop.f32.mrf.mxu2  ;;  %611 = vst.msk [vmem:[%s1034_s2 + $0x78] sm:$0xff] %vm595_vm5, %v592_v39 }
 0x16b   :  { %607 = vst.msk [vmem:[%s1034_s2 + $0x58] sm:$0xff] %vm595_vm5, %v582_v40 }
 0x17b   :  { %v570_v41 = vpop.f32.mrf.mxu1 }
 0x17c   :  { %v560_v42 = vpop.f32.mrf.mxu0  ;;  %602 = vst.msk [vmem:[%s1034_s2 + $0x30] sm:$0xff] %vm595_vm5, %v570_v41 }
 0x17d   :  { %598 = vst.msk [vmem:[%s1034_s2 + $0x10] sm:$0xff] %vm595_vm5, %v560_v42 }
 0x183   :  { %v572_v43 = vpop.f32.mrf.mxu1 }
 0x184   :  { %v562_v44 = vpop.f32.mrf.mxu0  ;;  %603 = vst.msk [vmem:[%s1034_s2 + $0x38] sm:$0xff] %vm595_vm5, %v572_v43 }
 0x185   :  { %599 = vst.msk [vmem:[%s1034_s2 + $0x18] sm:$0xff] %vm595_vm5, %v562_v44 }

// kernel: tpu_custom_call.1
= control target key start
LH: loop header
LB: loop body
LE: loop exit
PB: predicated region body
PF: predicated region fallthrough
CT: control target
= control target key end

     0   :  { %s748_s17 = smov 16   ;;  %s749_s18 = smov 32   ;;  %vm45_vm0 = vcmask 125952   ;;  %vm142_vm1 = vcmask 257152   ;;  %vm287_vm2 = vcmask 388352   ;;  %vm416_vm3 = vcmask 519552   ;;  %s1032_s0 = inlined_call_operand.vmem [shape: f32[128,16], index: 0, kind: input, shape index: {}]   ;;  %s1033_s1 = inlined_call_operand.vmem [shape: bf16[64,32], index: 1, kind: input, shape index: {}]   ;;  %s1034_s2 = inlined_call_operand.vmem [shape: f32[128,32], index: 2, kind: output, shape index: {}]  }
   0x1   :  { %v25_v0 = vld [vmem:[%s1032_s0 + $0x60] sm:$0xff]  ;;  %v26_v2 = vld [vmem:[%s1032_s0 + $0x68] sm:$0xff]  ;;  %s750_s27 = smov 48   ;;  %vm521_vm4 = vcmask 523264   ;;  %vm595_vm5 = vcmask 261120  }
   0x2   :  { %v21_v1 = vld [vmem:[%s1032_s0 + $0x40] sm:$0xff]  ;;  %716 = vtanh.f32 %v25_v0  ;;  %v22_v3 = vld [vmem:[%s1032_s0 + $0x48] sm:$0xff] }
   0x3   :  { %718 = vtanh.f32 %v21_v1  ;;  %v13_v31 = vld [vmem:[%s1032_s0] sm:$0xff]  ;;  %v14_v34 = vld [vmem:[%s1032_s0 + $0x8] sm:$0xff] }
   0x4   :  { %720 = vtanh.f32 %v26_v2  ;;  %v17_v40 = vld [vmem:[%s1032_s0 + $0x20] sm:$0xff]  ;;  %v18_v41 = vld [vmem:[%s1032_s0 + $0x28] sm:$0xff] }
   0x5   :  { %722 = vtanh.f32 %v22_v3 }
   0x6   :  { %724 = vtanh.f32 %v13_v31 }
   0x7   :  { %726 = vtanh.f32 %v14_v34 }
   0x8   :  { %v717_v4 = vpop.eup %716  ;;  %728 = vtanh.f32 %v17_v40 }
   0x9   :  { %v719_v5 = vpop.eup %718  ;;  %v74_v6 = vpack.c.bf16 %v717_v4, %v717_v4  ;;  %v171_v12 = vmul.f32 2.0, %v717_v4  ;;  %730 = vtanh.f32 %v18_v41 }
   0xa   :  { %v721_v7 = vpop.eup %720  ;;  %v70_v8 = vpack.c.bf16 %v719_v5, %v719_v5  ;;  %v167_v9 = vmul.f32 2.0, %v719_v5 }
   0xb   :  { %v723_v10 = vpop.eup %722  ;;  %118 = vrot.lane.b32.xlu1 %v74_v6, %s748_s17  ;;  %v172_v11 = vmul.f32 2.0, %v721_v7  ;;  %v75_v16 = vpack.c.bf16 %v721_v7, %v721_v7  ;;  %v187_v19 = vmul.f32 %v717_v4, %v171_v12 }
   0xc   :  { %110 = vrot.lane.b32.xlu0 %v70_v8, %s748_s17  ;;  %v183_v13 = vmul.f32 %v719_v5, %v167_v9  ;;  %v168_v14 = vmul.f32 2.0, %v723_v10  ;;  %v71_v18 = vpack.c.bf16 %v723_v10, %v723_v10  ;;  %v725_v42 = vpop.eup %724 }
   0xd   :  { %v188_v17 = vmul.f32 %v721_v7, %v172_v11  ;;  %v628_v23 = vadd.f32 -1.0, %v187_v19  ;;  %v159_v44 = vmul.f32 2.0, %v725_v42  ;;  %v727_v45 = vpop.eup %726  ;;  %v62_v49 = vpack.c.bf16 %v725_v42, %v725_v42 }
   0xe   :  { %v624_v15 = vadd.f32 -1.0, %v183_v13  ;;  %v184_v21 = vmul.f32 %v723_v10, %v168_v14  ;;  %v63_v47 = vpack.c.bf16 %v727_v45, %v727_v45  ;;  %v729_v50 = vpop.eup %728  ;;  %v160_v55 = vmul.f32 2.0, %v727_v45 }
   0xf   :  { %v629_v22 = vadd.f32 -1.0, %v188_v17  ;;  %v316_v28 = vmul.f32 %v628_v23, %v171_v12  ;;  %v219_v29 = vpack.c.bf16 %v628_v23, %v628_v23  ;;  %v175_v48 = vmul.f32 %v725_v42, %v159_v44  ;;  %v731_v51 = vpop.eup %730  ;;  %v28_v17 = vld [vmem:[%s1032_s0 + $0x78] sm:$0xff] }
  0x10   :  { %v215_v20 = vpack.c.bf16 %v624_v15, %v624_v15  ;;  %v625_v24 = vadd.f32 -1.0, %v184_v21  ;;  %v312_v25 = vmul.f32 %v624_v15, %v167_v9  ;;  %v164_v53 = vmul.f32 2.0, %v731_v51 }
  0x11   :  { %v220_v27 = vpack.c.bf16 %v629_v22, %v629_v22  ;;  %v332_v33 = vsub.f32 %v316_v28, %v717_v4  ;;  %v317_v37 = vmul.f32 %v629_v22, %v172_v11  ;;  %v616_v52 = vadd.f32 -1.0, %v175_v48 }
  0x12   :  { %255 = vrot.lane.b32.xlu2 %v215_v20, %s749_s18  ;;  %v216_v26 = vpack.c.bf16 %v625_v24, %v625_v24  ;;  %v313_v30 = vmul.f32 %v625_v24, %v168_v14  ;;  %v328_v32 = vsub.f32 %v312_v25, %v719_v5  ;;  %v163_v54 = vmul.f32 2.0, %v729_v50 }
  0x13   :  { %120 = vrot.lane.b32.xlu1 %v75_v16, %s748_s17  ;;  %v348_v38 = vpack.c.bf16 %v332_v33, %v332_v33  ;;  %v333_v43 = vsub.f32 %v317_v37, %v721_v7  ;;  %v66_v56 = vpack.c.bf16 %v729_v50, %v729_v50  ;;  %v207_v57 = vpack.c.bf16 %v616_v52, %v616_v52  ;;  %v23_v7 = vld [vmem:[%s1032_s0 + $0x50] sm:$0xff] }
  0x14   :  { %112 = vrot.lane.b32.xlu0 %v71_v18, %s748_s17  ;;  %v329_v35 = vsub.f32 %v313_v30, %v723_v10  ;;  %v344_v36 = vpack.c.bf16 %v328_v32, %v328_v32  ;;  %v180_v58 = vmul.f32 %v731_v51, %v164_v53  ;;  %v67_v59 = vpack.c.bf16 %v731_v51, %v731_v51  ;;  %v24_v10 = vld [vmem:[%s1032_s0 + $0x58] sm:$0xff]  ;;  %v27_v16 = vld [vmem:[%s1032_s0 + $0x70] sm:$0xff] }
  0x15   :  { %v349_v46 = vpack.c.bf16 %v333_v43, %v333_v43  ;;  %v179_v60 = vmul.f32 %v729_v50, %v163_v54  ;;  %v176_v61 = vmul.f32 %v727_v45, %v160_v55  ;;  %v304_v2 = vmul.f32 %v616_v52, %v159_v44 }
  0x16   :  { %v345_v39 = vpack.c.bf16 %v329_v35, %v329_v35  ;;  %v621_v62 = vadd.f32 -1.0, %v180_v58  ;;  %732 = vtanh.f32 %v23_v7  ;;  %v751_v52 = vmov 1065369472   ;;  %v20_v58 = vld [vmem:[%s1032_s0 + $0x38] sm:$0xff] }
  0x17   :  { %v620_v63 = vadd.f32 -1.0, %v179_v60  ;;  %v617_v0 = vadd.f32 -1.0, %v176_v61  ;;  %v320_v8 = vsub.f32 %v304_v2, %v725_v42  ;;  %734 = vtanh.f32 %v24_v10  ;;  %58 = vst.msk [vmem:[#allocation2 + $0x30] sm:$0xf] %vm45_vm0, %v751_v52 }
  0x18   :  { %v212_v3 = vpack.c.bf16 %v621_v62, %v621_v62  ;;  %v309_v13 = vmul.f32 %v621_v62, %v164_v53  ;;  %736 = vtanh.f32 %v27_v16  ;;  %46 = vst.msk [vmem:[#allocation2] sm:$0xf] %vm45_vm0, %v751_v52 }
  0x19   :  { %v208_v1 = vpack.c.bf16 %v617_v0, %v617_v0  ;;  %v308_v4 = vmul.f32 %v620_v63, %v163_v54  ;;  %v211_v5 = vpack.c.bf16 %v620_v63, %v620_v63  ;;  %v305_v6 = vmul.f32 %v617_v0, %v160_v55  ;;  %47 = vst.msk [vmem:[#allocation2 + $0x4] sm:$0xf] %vm45_vm0, %v751_v52 }
  0x1a   :  { %257 = vrot.lane.b32.xlu2 %v216_v26, %s749_s18  ;;  %v336_v12 = vpack.c.bf16 %v320_v8, %v320_v8  ;;  %v325_v19 = vsub.f32 %v309_v13, %v731_v51  ;;  %738 = vtanh.f32 %v28_v17  ;;  %48 = vst.msk [vmem:[#allocation2 + $0x8] sm:$0xf] %vm45_vm0, %v751_v52  ;;  %v699_v13 = vld [vmem:[%s1033_s1 + $0x18] sm:$0xff]  ;;  %v698_v17 = vld [vmem:[%s1033_s1 + $0x10] sm:$0xff] }
  0x1b   :  { %265 = vrot.lane.b32.xlu1 %v220_v27, %s749_s18  ;;  %v324_v9 = vsub.f32 %v308_v4, %v729_v50  ;;  %v321_v11 = vsub.f32 %v305_v6, %v727_v45  ;;  %v16_v50 = vld [vmem:[%s1032_s0 + $0x18] sm:$0xff]  ;;  %49 = vst.msk [vmem:[#allocation2 + $0xc] sm:$0xf] %vm45_vm0, %v751_v52  ;;  %701 = vmatpush.bf16.msra.mxu2 %v699_v13 }
  0x1c   :  { %263 = vrot.lane.b32.xlu0 %v219_v29, %s749_s18  ;;  %v733_v18 = vpop.eup %732  ;;  %v341_v22 = vpack.c.bf16 %v325_v19, %v325_v19  ;;  %50 = vst.msk [vmem:[#allocation2 + $0x10] sm:$0xf] %vm45_vm0, %v751_v52  ;;  %702 = vmatpush.bf16.msra.mxu3 %v699_v13 }
  0x1d   :  { %v340_v14 = vpack.c.bf16 %v324_v9, %v324_v9  ;;  %v337_v15 = vpack.c.bf16 %v321_v11, %v321_v11  ;;  %v169_v20 = vmul.f32 2.0, %v733_v18  ;;  %v735_v21 = vpop.eup %734  ;;  %v72_v25 = vpack.c.bf16 %v733_v18, %v733_v18  ;;  %51 = vst.msk [vmem:[#allocation2 + $0x14] sm:$0xf] %vm45_vm0, %v751_v52  ;;  %550 = vmatpush.bf16.msra.mxu0 %v699_v13 }
  0x1e   :  { %v73_v23 = vpack.c.bf16 %v735_v21, %v735_v21  ;;  %v737_v26 = vpop.eup %736  ;;  %v170_v31 = vmul.f32 2.0, %v735_v21  ;;  %52 = vst.msk [vmem:[#allocation2 + $0x18] sm:$0xf] %vm45_vm0, %v751_v52  ;;  %700 = vmatpush.bf16.msra.mxu1 %v699_v13 }
  0x1f   :  { %v185_v24 = vmul.f32 %v733_v18, %v169_v20  ;;  %v173_v30 = vmul.f32 2.0, %v737_v26  ;;  %v76_v32 = vpack.c.bf16 %v737_v26, %v737_v26  ;;  %53 = vst.msk [vmem:[#allocation2 + $0x1c] sm:$0xf] %vm45_vm0, %v751_v52  ;;  %704 = vmatpush.bf16.msra.mxu2 %v698_v17 }
  0x20   :  { %v739_v27 = vpop.eup %738  ;;  %v186_v37 = vmul.f32 %v735_v21, %v170_v31  ;;  %54 = vst.msk [vmem:[#allocation2 + $0x20] sm:$0xf] %vm45_vm0, %v751_v52  ;;  %705 = vmatpush.bf16.msra.mxu3 %v698_v17 }
  0x21   :  { %v626_v28 = vadd.f32 -1.0, %v185_v24  ;;  %v174_v29 = vmul.f32 2.0, %v739_v27  ;;  %v77_v35 = vpack.c.bf16 %v739_v27, %v739_v27  ;;  %55 = vst.msk [vmem:[#allocation2 + $0x24] sm:$0xf] %vm45_vm0, %v751_v52  ;;  %551 = vmatpush.bf16.msra.mxu0 %v698_v17 }
  0x22   :  { %384 = vrot.lane.b32.xlu2 %v344_v36, %s750_s27  ;;  %v189_v36 = vmul.f32 %v737_v26, %v173_v30  ;;  %v627_v40 = vadd.f32 -1.0, %v186_v37  ;;  %56 = vst.msk [vmem:[#allocation2 + $0x28] sm:$0xf] %vm45_vm0, %v751_v52  ;;  %703 = vmatpush.bf16.msra.mxu1 %v698_v17 }
  0x23   :  { %392 = vrot.lane.b32.xlu1 %v348_v38, %s750_s27  ;;  %v217_v33 = vpack.c.bf16 %v626_v28, %v626_v28  ;;  %v190_v34 = vmul.f32 %v739_v27, %v174_v29  ;;  %v314_v42 = vmul.f32 %v626_v28, %v169_v20  ;;  %57 = vst.msk [vmem:[#allocation2 + $0x2c] sm:$0xf] %vm45_vm0, %v751_v52 }
  0x24   :  { %386 = vrot.lane.b32.xlu0 %v345_v39, %s750_s27  ;;  %v630_v39 = vadd.f32 -1.0, %v189_v36  ;;  %v218_v41 = vpack.c.bf16 %v627_v40, %v627_v40  ;;  %59 = vst.msk [vmem:[#allocation2 + $0x34] sm:$0xf] %vm45_vm0, %v751_v52 }
  0x25   :  { %v631_v38 = vadd.f32 -1.0, %v190_v34  ;;  %v330_v48 = vsub.f32 %v314_v42, %v733_v18  ;;  %60 = vst.msk [vmem:[#allocation2 + $0x38] sm:$0xf] %vm45_vm0, %v751_v52 }
  0x26   :  { %v318_v44 = vmul.f32 %v630_v39, %v173_v30  ;;  %v221_v45 = vpack.c.bf16 %v630_v39, %v630_v39  ;;  %61 = vst.msk [vmem:[#allocation2 + $0x3c] sm:$0xf] %vm45_vm0, %v751_v52 }
  0x27   :  { %v222_v43 = vpack.c.bf16 %v631_v38, %v631_v38  ;;  %v346_v53 = vpack.c.bf16 %v330_v48, %v330_v48  ;;  %v319_v54 = vmul.f32 %v631_v38, %v174_v29  ;;  %v696_v29 = vld [vmem:[%s1033_s1] sm:$0xff] }
  0x29   :  { %v335_v60 = vsub.f32 %v319_v54, %v739_v27 }
  0x2a   :  { %394 = vrot.lane.b32.xlu2 %v349_v46, %s750_s27  ;;  %v315_v46 = vmul.f32 %v627_v40, %v170_v31 }
  0x2b   :  { %96 = vrot.lane.b32.xlu1 %v63_v47, %s748_s17  ;;  %v15_v47 = vld [vmem:[%s1032_s0 + $0x10] sm:$0xff]  ;;  %v351_v63 = vpack.c.bf16 %v335_v60, %v335_v60 }
  0x2c   :  { %94 = vrot.lane.b32.xlu0 %v62_v49, %s748_s17  ;;  %v334_v49 = vsub.f32 %v318_v44, %v737_v26  ;;  %v331_v51 = vsub.f32 %v315_v46, %v735_v21  ;;  %740 = vtanh.f32 %v15_v47  ;;  %v697_v26 = vld [vmem:[%s1033_s1 + $0x8] sm:$0xff] }
  0x2d   :  { %742 = vtanh.f32 %v16_v50  ;;  %707 = vmatpush.bf16.msra.mxu2 %v697_v26  ;;  %708 = vmatpush.bf16.msra.mxu3 %v697_v26 }
  0x2e   :  { %v350_v55 = vpack.c.bf16 %v334_v49, %v334_v49  ;;  %552 = vmatpush.bf16.msra.mxu0 %v697_v26  ;;  %706 = vmatpush.bf16.msra.mxu1 %v697_v26 }
  0x31   :  { %710 = vmatpush.bf16.msra.mxu2 %v696_v29  ;;  %711 = vmatpush.bf16.msra.mxu3 %v696_v29 }
  0x32   :  { %102 = vrot.lane.b32.xlu2 %v66_v56, %s748_s17  ;;  %v347_v56 = vpack.c.bf16 %v331_v51, %v331_v51  ;;  %553 = vmatpush.bf16.msra.mxu0 %v696_v29 }
  0x33   :  { %239 = vrot.lane.b32.xlu1 %v207_v57, %s749_s18  ;;  %v19_v57 = vld [vmem:[%s1032_s0 + $0x30] sm:$0xff]  ;;  %709 = vmatpush.bf16.msra.mxu1 %v696_v29 }
  0x34   :  { %104 = vrot.lane.b32.xlu0 %v67_v59, %s748_s17  ;;  %v852_v59 = vpop.eup %740  ;;  %744 = vtanh.f32 %v19_v57 }
  0x35   :  { %v161_v61 = vmul.f32 2.0, %v852_v59  ;;  %v859_v62 = vpop.eup %742  ;;  %746 = vtanh.f32 %v20_v58  ;;  %v64_v2 = vpack.c.bf16 %v852_v59, %v852_v59 }
  0x36   :  { %v65_v0 = vpack.c.bf16 %v859_v62, %v859_v62  ;;  %v162_v9 = vmul.f32 2.0, %v859_v62 }
  0x38   :  { %v178_v16 = vmul.f32 %v859_v62, %v162_v9 }
  0x3a   :  { %241 = vrot.lane.b32.xlu2 %v208_v1, %s749_s18  ;;  %v177_v1 = vmul.f32 %v852_v59, %v161_v61  ;;  %v619_v20 = vadd.f32 -1.0, %v178_v16 }
  0x3b   :  { %249 = vrot.lane.b32.xlu1 %v212_v3, %s749_s18  ;;  %v745_v3 = vpop.eup %744 }
  0x3c   :  { %247 = vrot.lane.b32.xlu0 %v211_v5, %s749_s18  ;;  %v873_v4 = vpop.eup %746  ;;  %v618_v5 = vadd.f32 -1.0, %v177_v1  ;;  %v165_v7 = vmul.f32 2.0, %v745_v3  ;;  %v68_v10 = vpack.c.bf16 %v745_v3, %v745_v3  ;;  %v307_v28 = vmul.f32 %v619_v20, %v162_v9 }
  0x3d   :  { %v166_v6 = vmul.f32 2.0, %v873_v4 }
  0x3e   :  { %v209_v11 = vpack.c.bf16 %v618_v5, %v618_v5 }
  0x42   :  { %368 = vrot.lane.b32.xlu2 %v336_v12, %s750_s27  ;;  %v182_v12 = vmul.f32 %v873_v4, %v166_v6 }
  0x43   :  { %376 = vrot.lane.b32.xlu1 %v340_v14, %s750_s27  ;;  %v69_v14 = vpack.c.bf16 %v873_v4, %v873_v4 }
  0x44   :  { %370 = vrot.lane.b32.xlu0 %v337_v15, %s750_s27  ;;  %v181_v15 = vmul.f32 %v745_v3, %v165_v7  ;;  %v623_v18 = vadd.f32 -1.0, %v182_v12 }
  0x46   :  { %v622_v19 = vadd.f32 -1.0, %v181_v15  ;;  %v214_v24 = vpack.c.bf16 %v623_v18, %v623_v18  ;;  %v311_v37 = vmul.f32 %v623_v18, %v166_v6 }
  0x48   :  { %v213_v27 = vpack.c.bf16 %v622_v19, %v622_v19  ;;  %v327_v40 = vsub.f32 %v311_v37, %v873_v4 }
  0x4a   :  { %378 = vrot.lane.b32.xlu2 %v341_v22, %s750_s27  ;;  %v210_v22 = vpack.c.bf16 %v619_v20, %v619_v20  ;;  %v343_v44 = vpack.c.bf16 %v327_v40, %v327_v40 }
  0x4b   :  { %116 = vrot.lane.b32.xlu1 %v73_v23, %s748_s17  ;;  %v306_v23 = vmul.f32 %v618_v5, %v161_v61 }
  0x4c   :  { %114 = vrot.lane.b32.xlu0 %v72_v25, %s748_s17  ;;  %v310_v25 = vmul.f32 %v622_v19, %v165_v7 }
  0x4d   :  { %v322_v30 = vsub.f32 %v306_v23, %v852_v59 }
  0x4e   :  { %v326_v31 = vsub.f32 %v310_v25, %v745_v3 }
  0x4f   :  { %v338_v36 = vpack.c.bf16 %v322_v30, %v322_v30 }
  0x50   :  { %v342_v38 = vpack.c.bf16 %v326_v31, %v326_v31 }
  0x52   :  { %122 = vrot.lane.b32.xlu2 %v76_v32, %s748_s17  ;;  %v323_v32 = vsub.f32 %v307_v28, %v859_v62 }
  0x53   :  { %259 = vrot.lane.b32.xlu1 %v217_v33, %s749_s18 }
  0x54   :  { %124 = vrot.lane.b32.xlu0 %v77_v35, %s748_s17  ;;  %v339_v39 = vpack.c.bf16 %v323_v32, %v323_v32 }
  0x5a   :  { %261 = vrot.lane.b32.xlu2 %v218_v41, %s749_s18 }
  0x5b   :  { %269 = vrot.lane.b32.xlu1 %v222_v43, %s749_s18 }
  0x5c   :  { %267 = vrot.lane.b32.xlu0 %v221_v45, %s749_s18 }
  0x62   :  { %388 = vrot.lane.b32.xlu2 %v346_v53, %s750_s27 }
  0x63   :  { %396 = vrot.lane.b32.xlu1 %v350_v55, %s750_s27 }
  0x64   :  { %390 = vrot.lane.b32.xlu0 %v347_v56, %s750_s27 }
  0x6a   :  { %398 = vrot.lane.b32.xlu2 %v351_v63, %s750_s27 }
  0x6b   :  { %100 = vrot.lane.b32.xlu1 %v65_v0, %s748_s17 }
  0x6c   :  { %98 = vrot.lane.b32.xlu0 %v64_v2, %s748_s17  ;;  %v256_v8 = vpop.permute.xlu2 %255 }
  0x72   :  { %106 = vrot.lane.b32.xlu2 %v68_v10, %s748_s17 }
  0x73   :  { %243 = vrot.lane.b32.xlu1 %v209_v11, %s749_s18 }
  0x74   :  { %108 = vrot.lane.b32.xlu0 %v69_v14, %s748_s17  ;;  %v258_v21 = vpop.permute.xlu2 %257 }
  0x7a   :  { %245 = vrot.lane.b32.xlu2 %v210_v22, %s749_s18 }
  0x7b   :  { %253 = vrot.lane.b32.xlu1 %v214_v24, %s749_s18 }
  0x7c   :  { %251 = vrot.lane.b32.xlu0 %v213_v27, %s749_s18  ;;  %v385_v33 = vpop.permute.xlu2 %384 }
  0x7d   :  { %v119_v34 = vpop.permute.xlu1 %118 }
  0x7e   :  { %155 = vst.msk [vmem:[#allocation2 + $0x30] sm:$0xf] %vm142_vm1, %v119_v34  ;;  %v111_v35 = vpop.permute.xlu0 %110 }
  0x7f   :  { %151 = vst.msk [vmem:[#allocation2 + $0x20] sm:$0xf] %vm142_vm1, %v111_v35 }
  0x80   :  { %296 = vst.msk [vmem:[#allocation2 + $0x20] sm:$0xf] %vm287_vm2, %v256_v8 }
  0x81   :  { %425 = vst.msk [vmem:[#allocation2 + $0x20] sm:$0xf] %vm416_vm3, %v385_v33 }
  0x82   :  { %372 = vrot.lane.b32.xlu2 %v338_v36, %s750_s27 }
  0x83   :  { %380 = vrot.lane.b32.xlu1 %v342_v38, %s750_s27 }
  0x84   :  { %374 = vrot.lane.b32.xlu0 %v339_v39, %s750_s27  ;;  %v395_v41 = vpop.permute.xlu2 %394 }
  0x85   :  { %v121_v42 = vpop.permute.xlu1 %120 }
  0x86   :  { %156 = vst.msk [vmem:[#allocation2 + $0x34] sm:$0xf] %vm142_vm1, %v121_v42  ;;  %v113_v43 = vpop.permute.xlu0 %112 }
  0x87   :  { %152 = vst.msk [vmem:[#allocation2 + $0x24] sm:$0xf] %vm142_vm1, %v113_v43 }
  0x88   :  { %297 = vst.msk [vmem:[#allocation2 + $0x24] sm:$0xf] %vm287_vm2, %v258_v21 }
  0x8a   :  { %382 = vrot.lane.b32.xlu2 %v343_v44, %s750_s27 }
  0x8c   :  { %v103_v45 = vpop.permute.xlu2 %102 }
  0x8d   :  { %v266_v46 = vpop.permute.xlu1 %265  ;;  %147 = vst.msk [vmem:[#allocation2 + $0x10] sm:$0xf] %vm142_vm1, %v103_v45 }
  0x8e   :  { %301 = vst.msk [vmem:[#allocation2 + $0x34] sm:$0xf] %vm287_vm2, %v266_v46  ;;  %v264_v47 = vpop.permute.xlu0 %263 }
  0x8f   :  { %300 = vst.msk [vmem:[#allocation2 + $0x30] sm:$0xf] %vm287_vm2, %v264_v47 }
  0x90   :  { %430 = vst.msk [vmem:[#allocation2 + $0x34] sm:$0xf] %vm416_vm3, %v395_v41 }
  0x94   :  { %v242_v48 = vpop.permute.xlu2 %241 }
  0x95   :  { %v393_v49 = vpop.permute.xlu1 %392 }
  0x96   :  { %429 = vst.msk [vmem:[#allocation2 + $0x30] sm:$0xf] %vm416_vm3, %v393_v49  ;;  %v387_v50 = vpop.permute.xlu0 %386 }
  0x97   :  { %426 = vst.msk [vmem:[#allocation2 + $0x24] sm:$0xf] %vm416_vm3, %v387_v50 }
  0x9c   :  { %v369_v51 = vpop.permute.xlu2 %368 }
  0x9d   :  { %v97_v52 = vpop.permute.xlu1 %96  ;;  %v694_v53 = vld [vmem:[#allocation2 + $0x30] sm:$0xff] }
  0x9e   :  { %144 = vst.msk [vmem:[#allocation2 + $0x4] sm:$0xf] %vm142_vm1, %v97_v52  ;;  %v95_v54 = vpop.permute.xlu0 %94  ;;  %v692_v55 = vld [vmem:[#allocation2 + $0x20] sm:$0xff]  ;;  %686 = vmatmul.msk.bf16.vlgmr.msra.gmra.mxu3 %vm521_vm4, %v694_v53 }
  0x9f   :  { %143 = vst.msk [vmem:[#allocation2] sm:$0xf] %vm142_vm1, %v95_v54  ;;  %684 = vmatmul.msk.bf16.vlgmr.msra.gmra.mxu2 %vm521_vm4, %v692_v55 }
  0xa0   :  { %289 = vst.msk [vmem:[#allocation2 + $0x4] sm:$0xf] %vm287_vm2, %v242_v48 }
  0xa4   :  { %v379_v56 = vpop.permute.xlu2 %378 }
  0xa5   :  { %v240_v57 = vpop.permute.xlu1 %239 }
  0xa6   :  { %288 = vst.msk [vmem:[#allocation2] sm:$0xf] %vm287_vm2, %v240_v57  ;;  %v105_v58 = vpop.permute.xlu0 %104 }
  0xa7   :  { %148 = vst.msk [vmem:[#allocation2 + $0x14] sm:$0xf] %vm142_vm1, %v105_v58 }
  0xa8   :  { %417 = vst.msk [vmem:[#allocation2] sm:$0xf] %vm416_vm3, %v369_v51 }
  0xac   :  { %v123_v59 = vpop.permute.xlu2 %122 }
  0xad   :  { %v250_v60 = vpop.permute.xlu1 %249  ;;  %157 = vst.msk [vmem:[#allocation2 + $0x38] sm:$0xf] %vm142_vm1, %v123_v59 }
  0xae   :  { %293 = vst.msk [vmem:[#allocation2 + $0x14] sm:$0xf] %vm287_vm2, %v250_v60  ;;  %v248_v61 = vpop.permute.xlu0 %247 }
  0xaf   :  { %292 = vst.msk [vmem:[#allocation2 + $0x10] sm:$0xf] %vm287_vm2, %v248_v61 }
  0xb0   :  { %422 = vst.msk [vmem:[#allocation2 + $0x14] sm:$0xf] %vm416_vm3, %v379_v56 }
  0xb4   :  { %v262_v62 = vpop.permute.xlu2 %261 }
  0xb5   :  { %v377_v63 = vpop.permute.xlu1 %376 }
  0xb6   :  { %421 = vst.msk [vmem:[#allocation2 + $0x10] sm:$0xf] %vm416_vm3, %v377_v63  ;;  %v371_v0 = vpop.permute.xlu0 %370 }
  0xb7   :  { %418 = vst.msk [vmem:[#allocation2 + $0x4] sm:$0xf] %vm416_vm3, %v371_v0 }
  0xbc   :  { %v389_v1 = vpop.permute.xlu2 %388 }
  0xbd   :  { %v117_v2 = vpop.permute.xlu1 %116  ;;  %v690_v3 = vld [vmem:[#allocation2 + $0x10] sm:$0xff] }
  0xbe   :  { %154 = vst.msk [vmem:[#allocation2 + $0x2c] sm:$0xf] %vm142_vm1, %v117_v2  ;;  %v115_v4 = vpop.permute.xlu0 %114  ;;  %v688_v5 = vld [vmem:[#allocation2] sm:$0xff]  ;;  %682 = vmatmul.msk.bf16.vlgmr.msra.gmra.mxu1 %vm521_vm4, %v690_v3 }
  0xbf   :  { %153 = vst.msk [vmem:[#allocation2 + $0x28] sm:$0xf] %vm142_vm1, %v115_v4  ;;  %680 = vmatmul.msk.bf16.vlgmr.msra.gmra.mxu0 %vm521_vm4, %v688_v5 }
  0xc0   :  { %299 = vst.msk [vmem:[#allocation2 + $0x2c] sm:$0xf] %vm287_vm2, %v262_v62 }
  0xc4   :  { %v399_v6 = vpop.permute.xlu2 %398 }
  0xc5   :  { %v260_v7 = vpop.permute.xlu1 %259 }
  0xc6   :  { %298 = vst.msk [vmem:[#allocation2 + $0x28] sm:$0xf] %vm287_vm2, %v260_v7  ;;  %v125_v8 = vpop.permute.xlu0 %124 }
  0xc7   :  { %158 = vst.msk [vmem:[#allocation2 + $0x3c] sm:$0xf] %vm142_vm1, %v125_v8 }
  0xc8   :  { %427 = vst.msk [vmem:[#allocation2 + $0x28] sm:$0xf] %vm416_vm3, %v389_v1 }
  0xcc   :  { %v107_v9 = vpop.permute.xlu2 %106 }
  0xcd   :  { %v270_v10 = vpop.permute.xlu1 %269  ;;  %149 = vst.msk [vmem:[#allocation2 + $0x18] sm:$0xf] %vm142_vm1, %v107_v9 }
  0xce   :  { %303 = vst.msk [vmem:[#allocation2 + $0x3c] sm:$0xf] %vm287_vm2, %v270_v10  ;;  %v268_v11 = vpop.permute.xlu0 %267 }
  0xcf   :  { %302 = vst.msk [vmem:[#allocation2 + $0x38] sm:$0xf] %vm287_vm2, %v268_v11 }
  0xd0   :  { %432 = vst.msk [vmem:[#allocation2 + $0x3c] sm:$0xf] %vm416_vm3, %v399_v6 }
  0xd4   :  { %v246_v14 = vpop.permute.xlu2 %245 }
  0xd5   :  { %v397_v12 = vpop.permute.xlu1 %396 }
  0xd6   :  { %431 = vst.msk [vmem:[#allocation2 + $0x38] sm:$0xf] %vm416_vm3, %v397_v12  ;;  %v391_v13 = vpop.permute.xlu0 %390 }
  0xd7   :  { %428 = vst.msk [vmem:[#allocation2 + $0x2c] sm:$0xf] %vm416_vm3, %v391_v13 }
  0xdc   :  { %v373_v19 = vpop.permute.xlu2 %372 }
  0xdd   :  { %v101_v15 = vpop.permute.xlu1 %100  ;;  %v695_v16 = vld [vmem:[#allocation2 + $0x38] sm:$0xff] }
  0xde   :  { %146 = vst.msk [vmem:[#allocation2 + $0xc] sm:$0xf] %vm142_vm1, %v101_v15  ;;  %v99_v17 = vpop.permute.xlu0 %98  ;;  %v693_v18 = vld [vmem:[#allocation2 + $0x28] sm:$0xff]  ;;  %687 = vmatmul.msk.bf16.gmra.mxu3 %vm521_vm4, %v695_v16 }
  0xdf   :  { %145 = vst.msk [vmem:[#allocation2 + $0x8] sm:$0xf] %vm142_vm1, %v99_v17  ;;  %685 = vmatmul.msk.bf16.gmra.mxu2 %vm521_vm4, %v693_v18 }
  0xe0   :  { %291 = vst.msk [vmem:[#allocation2 + $0xc] sm:$0xf] %vm287_vm2, %v246_v14 }
  0xe4   :  { %v383_v23 = vpop.permute.xlu2 %382 }
  0xe5   :  { %v244_v20 = vpop.permute.xlu1 %243 }
  0xe6   :  { %290 = vst.msk [vmem:[#allocation2 + $0x8] sm:$0xf] %vm287_vm2, %v244_v20  ;;  %v109_v21 = vpop.permute.xlu0 %108 }
  0xe7   :  { %150 = vst.msk [vmem:[#allocation2 + $0x1c] sm:$0xf] %vm142_vm1, %v109_v21 }
  0xe8   :  { %419 = vst.msk [vmem:[#allocation2 + $0x8] sm:$0xf] %vm416_vm3, %v373_v19 }
  0xed   :  { %v254_v22 = vpop.permute.xlu1 %253 }
  0xee   :  { %295 = vst.msk [vmem:[#allocation2 + $0x1c] sm:$0xf] %vm287_vm2, %v254_v22  ;;  %v252_v24 = vpop.permute.xlu0 %251 }
  0xef   :  { %294 = vst.msk [vmem:[#allocation2 + $0x18] sm:$0xf] %vm287_vm2, %v252_v24 }
  0xf0   :  { %424 = vst.msk [vmem:[#allocation2 + $0x1c] sm:$0xf] %vm416_vm3, %v383_v23 }
  0xf5   :  { %v381_v25 = vpop.permute.xlu1 %380 }
  0xf6   :  { %423 = vst.msk [vmem:[#allocation2 + $0x18] sm:$0xf] %vm416_vm3, %v381_v25  ;;  %v375_v26 = vpop.permute.xlu0 %374 }
  0xf7   :  { %420 = vst.msk [vmem:[#allocation2 + $0xc] sm:$0xf] %vm416_vm3, %v375_v26 }
  0xfd   :  { %v691_v27 = vld [vmem:[#allocation2 + $0x18] sm:$0xff] }
  0xfe   :  { %v689_v28 = vld [vmem:[#allocation2 + $0x8] sm:$0xff]  ;;  %683 = vmatmul.msk.bf16.gmra.mxu1 %vm521_vm4, %v691_v27 }
  0xff   :  { %681 = vmatmul.msk.bf16.gmra.mxu0 %vm521_vm4, %v689_v28 }
 0x121   :  { %v585_v29 = vpop.f32.mrf.mxu3 }
 0x122   :  { %v575_v30 = vpop.f32.mrf.mxu2  ;;  %608 = vst.msk [vmem:[%s1034_s2 + $0x60] sm:$0xff] %vm595_vm5, %v585_v29 }
 0x123   :  { %604 = vst.msk [vmem:[%s1034_s2 + $0x40] sm:$0xff] %vm595_vm5, %v575_v30 }
 0x129   :  { %v587_v31 = vpop.f32.mrf.mxu3 }
 0x12a   :  { %v577_v32 = vpop.f32.mrf.mxu2  ;;  %609 = vst.msk [vmem:[%s1034_s2 + $0x68] sm:$0xff] %vm595_vm5, %v587_v31 }
 0x12b   :  { %605 = vst.msk [vmem:[%s1034_s2 + $0x48] sm:$0xff] %vm595_vm5, %v577_v32 }
 0x13b   :  { %v565_v33 = vpop.f32.mrf.mxu1 }
 0x13c   :  { %v555_v34 = vpop.f32.mrf.mxu0  ;;  %600 = vst.msk [vmem:[%s1034_s2 + $0x20] sm:$0xff] %vm595_vm5, %v565_v33 }
 0x13d   :  { %596 = vst.msk [vmem:[%s1034_s2] sm:$0xff] %vm595_vm5, %v555_v34 }
 0x143   :  { %v567_v35 = vpop.f32.mrf.mxu1 }
 0x144   :  { %v557_v36 = vpop.f32.mrf.mxu0  ;;  %601 = vst.msk [vmem:[%s1034_s2 + $0x28] sm:$0xff] %vm595_vm5, %v567_v35 }
 0x145   :  { %597 = vst.msk [vmem:[%s1034_s2 + $0x8] sm:$0xff] %vm595_vm5, %v557_v36 }
 0x161   :  { %v590_v37 = vpop.f32.mrf.mxu3 }
 0x162   :  { %v580_v38 = vpop.f32.mrf.mxu2  ;;  %610 = vst.msk [vmem:[%s1034_s2 + $0x70] sm:$0xff] %vm595_vm5, %v590_v37 }
 0x163   :  { %606 = vst.msk [vmem:[%s1034_s2 + $0x50] sm:$0xff] %vm595_vm5, %v580_v38 }
 0x169   :  { %v592_v39 = vpop.f32.mrf.mxu3 }
 0x16a   :  { %v582_v40 = vpop.f32.mrf.mxu2  ;;  %611 = vst.msk [vmem:[%s1034_s2 + $0x78] sm:$0xff] %vm595_vm5, %v592_v39 }
 0x16b   :  { %607 = vst.msk [vmem:[%s1034_s2 + $0x58] sm:$0xff] %vm595_vm5, %v582_v40 }
 0x17b   :  { %v570_v41 = vpop.f32.mrf.mxu1 }
 0x17c   :  { %v560_v42 = vpop.f32.mrf.mxu0  ;;  %602 = vst.msk [vmem:[%s1034_s2 + $0x30] sm:$0xff] %vm595_vm5, %v570_v41 }
 0x17d   :  { %598 = vst.msk [vmem:[%s1034_s2 + $0x10] sm:$0xff] %vm595_vm5, %v560_v42 }
 0x183   :  { %v572_v43 = vpop.f32.mrf.mxu1 }
 0x184   :  { %v562_v44 = vpop.f32.mrf.mxu0  ;;  %603 = vst.msk [vmem:[%s1034_s2 + $0x38] sm:$0xff] %vm595_vm5, %v572_v43 }
 0x185   :  { %599 = vst.msk [vmem:[%s1034_s2 + $0x18] sm:$0xff] %vm595_vm5, %v562_v44 }

</bundles_post_ra>
